<compile_context>
chip_gen: v5e
topology: v5e:2x2
jax: 0.10.0
libtpu: 0.0.40
codegen_flags: <defaults>
</compile_context>

<pallas_src>
import jax
import jax.numpy as jnp
from jax.experimental import pallas as pl
from jax.experimental.pallas import tpu as pltpu


# ----------------------------------------------------------------------------
# Kernel 1: fused Q/K/V conv3x3 (+folded BN, bias, ReLU) + channel attention.
# ----------------------------------------------------------------------------
def _attn_kernel(qcols_ref, fcols_ref, wq_ref, wk_ref, wv_ref,
                 sq_ref, bq_ref, sk_ref, bk_ref, sv_ref, bv_ref, o_ref):
    # qcols_ref / fcols_ref : (1, TH, W, 9C)  im2col of padded inputs
    # wq/wk/wv              : (9C, C)
    # s*/b*                 : (1, C)   folded BN scale / shift
    # o_ref                 : (1, TH, W, C)   queried_values tile
    TH = o_ref.shape[1]
    W = o_ref.shape[2]
    C = o_ref.shape[3]
    K9 = wq_ref.shape[0]

    qc = qcols_ref[0].reshape(TH * W, K9)
    fc = fcols_ref[0].reshape(TH * W, K9)

    q = jnp.maximum(
        jnp.dot(qc, wq_ref[...], preferred_element_type=jnp.float32)
        * sq_ref[...] + bq_ref[...], 0.0)
    k = jnp.maximum(
        jnp.dot(fc, wk_ref[...], preferred_element_type=jnp.float32)
        * sk_ref[...] + bk_ref[...], 0.0)
    v = jnp.maximum(
        jnp.dot(fc, wv_ref[...], preferred_element_type=jnp.float32)
        * sv_ref[...] + bv_ref[...], 0.0)

    # Channel attention per output row h: tokens = channels, feature dim = W.
    qt = jnp.transpose(q.reshape(TH, W, C), (0, 2, 1))   # (TH, C, W)
    kt = jnp.transpose(k.reshape(TH, W, C), (0, 2, 1))
    vt = jnp.transpose(v.reshape(TH, W, C), (0, 2, 1))

    temp = 1.0 / float(W) ** 0.5
    s = jnp.einsum('hlw,hsw->hls', qt, kt,
                   preferred_element_type=jnp.float32) * temp     # (TH, C, C)
    m = jnp.max(s, axis=-1, keepdims=True)
    p = jnp.exp(s - m)
    a = p / jnp.sum(p, axis=-1, keepdims=True)
    qv = jnp.einsum('hls,hsw->hlw', a, vt,
                    preferred_element_type=jnp.float32)           # (TH, C, W)

    o_ref[0] = jnp.transpose(qv, (0, 2, 1))                       # (TH, W, C)


# ----------------------------------------------------------------------------
# Kernel 2: mlp conv3x3 (+folded BN, ReLU) + residual add.
# ----------------------------------------------------------------------------
def _mlp_kernel(ccols_ref, res_ref, wm_ref, sm_ref, bm_ref, o_ref):
    # ccols_ref : (1, TH, W, 18C)  im2col of padded cat([input, queried])
    # res_ref   : (1, TH, W, C)    input_feature tile (residual)
    # wm_ref    : (18C, C); sm/bm : (1, C)
    # o_ref     : (1, TH, W, C)
    TH = o_ref.shape[1]
    W = o_ref.shape[2]
    C = o_ref.shape[3]
    K18 = wm_ref.shape[0]

    cc = ccols_ref[0].reshape(TH * W, K18)
    y = jnp.dot(cc, wm_ref[...], preferred_element_type=jnp.float32)
    y = jnp.maximum(y * sm_ref[...] + bm_ref[...], 0.0)
    o_ref[0] = res_ref[0] + y.reshape(TH, W, C)


# ----------------------------------------------------------------------------
# Wrapper helpers
# ----------------------------------------------------------------------------
def _fold_bn(gamma, beta, mean, var, conv_bias=None, eps=1e-5):
    scale = gamma / jnp.sqrt(var + eps)
    bias = conv_bias if conv_bias is not None else 0.0
    shift = (bias - mean) * scale + beta
    return scale, shift


def _im2col_3x3(x_nhwc):
    """(N,H,W,C) -> (N,H,W,9C), zero padding 1, taps (dy,dx) row-major."""
    n, h, w, c = x_nhwc.shape
    xp = jnp.pad(x_nhwc, ((0, 0), (1, 1), (1, 1), (0, 0)))
    cols = [xp[:, dy:dy + h, dx:dx + w, :] for dy in range(3) for dx in range(3)]
    return jnp.concatenate(cols, axis=-1)


def _choose_tile_h(h, w, c, budget_bytes=8 << 20):
    """Largest divisor of H whose double-buffered blocks fit the VMEM budget."""
    # ~ (two 9C/one 18C input block + residual + output) * 4B * double-buffer
    per_row = max(1, w * c * 4 * 40)
    th_max = max(1, budget_bytes // per_row)
    th = 1
    for d in range(1, h + 1):
        if h % d == 0 and d <= th_max:
            th = d
    # Keep at least two H tiles (when cheap) so DMA/compute overlap is exercised.
    if th == h and h >= 16 and h % 2 == 0:
        th = h // 2
    return th


def init_params(key, c):
    """Deterministic synthetic parameters matching the module's shapes."""
    keys = jax.random.split(key, 21)
    it = iter(range(21))

    def conv_w(k, cout, cin):
        return jax.random.normal(k, (cout, cin, 3, 3), jnp.float32) / ((cin * 9) ** 0.5)

    def bn_params(c_):
        k1, k2, k3, k4 = (keys[next(it)] for _ in range(4))
        gamma = 1.0 + 0.1 * jax.random.normal(k1, (c_,), jnp.float32)
        beta = 0.05 * jax.random.normal(k2, (c_,), jnp.float32)
        mean = 0.02 * jax.random.normal(k3, (c_,), jnp.float32)
        var = 1.0 + 0.05 * jnp.abs(jax.random.normal(k4, (c_,), jnp.float32))
        return gamma, beta, mean, var

    def hwio(w):  # torch (Cout, Cin, 3, 3) -> (3, 3, Cin, Cout)
        return jnp.transpose(w, (2, 3, 1, 0))

    # cam_layer0: Conv2d(C, C, 3, padding=1, bias=True) + BN + ReLU
    w0 = conv_w(keys[next(it)], c, c)
    b0 = 0.05 * jax.random.normal(keys[next(it)], (c,), jnp.float32)
    sq, bq = _fold_bn(*bn_params(c), conv_bias=b0)
    # cam_layer1 / cam_layer2: Conv2d(C, C, 3, padding=1, bias=False) + BN + ReLU
    w1 = conv_w(keys[next(it)], c, c)
    sk, bk = _fold_bn(*bn_params(c))
    w2 = conv_w(keys[next(it)], c, c)
    sv, bv = _fold_bn(*bn_params(c))
    # mlp: Conv2d(2C, C, 3, padding=1, bias=False) + BN + ReLU
    wm = conv_w(keys[next(it)], c, 2 * c)
    sm, bm = _fold_bn(*bn_params(c))

    return {
        "wq_hwio": hwio(w0), "sq": sq, "bq": bq,
        "wk_hwio": hwio(w1), "sk": sk, "bk": bk,
        "wv_hwio": hwio(w2), "sv": sv, "bv": bv,
        "wm_hwio": hwio(wm), "sm": sm, "bm": bm,
    }


# ----------------------------------------------------------------------------
# Forward pass
# ----------------------------------------------------------------------------
@jax.jit
def cross_transformer_forward(input_feature, features, params):
    N, C, H, W = input_feature.shape
    x = jnp.transpose(input_feature, (0, 2, 3, 1)).astype(jnp.float32)  # NHWC
    f = jnp.transpose(features, (0, 2, 3, 1)).astype(jnp.float32)

    TH = _choose_tile_h(H, W, C)
    assert H % TH == 0
    grid = (N, H // TH)

    cp = pltpu.CompilerParams(
        dimension_semantics=("parallel", "parallel"),
        vmem_limit_bytes=32 * 1024 * 1024)

    qcols = _im2col_3x3(x)                       # (N, H, W, 9C)
    fcols = _im2col_3x3(f)                       # (N, H, W, 9C)

    wq = params["wq_hwio"].reshape(9 * C, C)
    wk = params["wk_hwio"].reshape(9 * C, C)
    wv = params["wv_hwio"].reshape(9 * C, C)
    sq = params["sq"].reshape(1, C); bq = params["bq"].reshape(1, C)
    sk = params["sk"].reshape(1, C); bk = params["bk"].reshape(1, C)
    sv = params["sv"].reshape(1, C); bv = params["bv"].reshape(1, C)

    tile_map = lambda n, t: (n, t, 0, 0)
    full_map2 = lambda n, t: (0, 0)

    queried = pl.pallas_call(
        _attn_kernel,
        out_shape=jax.ShapeDtypeStruct((N, H, W, C), jnp.float32),
        grid=grid,
        in_specs=[
            pl.BlockSpec((1, TH, W, 9 * C), tile_map),
            pl.BlockSpec((1, TH, W, 9 * C), tile_map),
            pl.BlockSpec((9 * C, C), full_map2),
            pl.BlockSpec((9 * C, C), full_map2),
            pl.BlockSpec((9 * C, C), full_map2),
            pl.BlockSpec((1, C), full_map2),
            pl.BlockSpec((1, C), full_map2),
            pl.BlockSpec((1, C), full_map2),
            pl.BlockSpec((1, C), full_map2),
            pl.BlockSpec((1, C), full_map2),
            pl.BlockSpec((1, C), full_map2),
        ],
        out_specs=pl.BlockSpec((1, TH, W, C), tile_map),
        compiler_params=cp,
    )(qcols, fcols, wq, wk, wv, sq, bq, sk, bk, sv, bv)

    cat = jnp.concatenate([x, queried], axis=-1)  # (N, H, W, 2C)
    ccols = _im2col_3x3(cat)                      # (N, H, W, 18C)

    wm = params["wm_hwio"].reshape(9 * 2 * C, C)
    sm = params["sm"].reshape(1, C); bm = params["bm"].reshape(1, C)

    out_nhwc = pl.pallas_call(
        _mlp_kernel,
        out_shape=jax.ShapeDtypeStruct((N, H, W, C), jnp.float32),
        grid=grid,
        in_specs=[
            pl.BlockSpec((1, TH, W, 18 * C), tile_map),
            pl.BlockSpec((1, TH, W, C), tile_map),
            pl.BlockSpec((18 * C, C), full_map2),
            pl.BlockSpec((1, C), full_map2),
            pl.BlockSpec((1, C), full_map2),
        ],
        out_specs=pl.BlockSpec((1, TH, W, C), tile_map),
        compiler_params=cp,
    )(ccols, x, wm, sm, bm)

    return jnp.transpose(out_nhwc, (0, 3, 1, 2))  # back to NCHW


# ----------------------------------------------------------------------------
# Pure-JAX reference (for correctness checking)
# ----------------------------------------------------------------------------
def cross_transformer_reference(input_feature, features, params):
    x = jnp.transpose(input_feature, (0, 2, 3, 1)).astype(jnp.float32)
    f = jnp.transpose(features, (0, 2, 3, 1)).astype(jnp.float32)
    W = x.shape[2]

    def cbr(inp, w_hwio, scale, shift):
        y = jax.lax.conv_general_dilated(
            inp, w_hwio, window_strides=(1, 1), padding="SAME",
            dimension_numbers=("NHWC", "HWIO", "NHWC"))
        return jnp.maximum(y * scale + shift, 0.0)

    q = cbr(x, params["wq_hwio"], params["sq"], params["bq"])
    k = cbr(f, params["wk_hwio"], params["sk"], params["bk"])
    v = cbr(f, params["wv_hwio"], params["sv"], params["bv"])

    s = jnp.einsum("nhwl,nhws->nhls", q, k) * (1.0 / float(W) ** 0.5)
    a = jax.nn.softmax(s, axis=-1)
    qv = jnp.einsum("nhls,nhws->nhwl", a, v)

    cat = jnp.concatenate([x, qv], axis=-1)
    m = cbr(cat, params["wm_hwio"], params["sm"], params["bm"])
    out = x + m
    return jnp.transpose(out, (0, 3, 1, 2))


if __name__ == "__main__":
    key = jax.random.PRNGKey(0)
    kx, kf, kp = jax.random.split(key, 3)

    N, C, H, W = 2, 4, 16, 16
    input_feature = jax.random.normal(kx, (N, C, H, W), jnp.float32)
    features = jax.random.normal(kf, (N, C, H, W), jnp.float32)
    params = init_params(kp, C)

    out = cross_transformer_forward(input_feature, features, params)
    out = jax.block_until_ready(out)

    ref = cross_transformer_reference(input_feature, features, params)
    assert out.shape == (N, C, H, W), out.shape
    max_err = float(jnp.max(jnp.abs(out - ref)))
    assert jnp.allclose(out, ref, rtol=1e-3, atol=1e-3), max_err

    print("KERNEL_OK")
</pallas_src>

<mosaic_0001>
module attributes {stable_mosaic.version = 11 : i64} {
  func.func @_attn_kernel(%arg0: i32, %arg1: i32, %arg2: memref<1x8x16x36xf32, #tpu.memory_space<vmem>>, %arg3: memref<1x8x16x36xf32, #tpu.memory_space<vmem>>, %arg4: memref<36x4xf32, #tpu.memory_space<vmem>>, %arg5: memref<36x4xf32, #tpu.memory_space<vmem>>, %arg6: memref<36x4xf32, #tpu.memory_space<vmem>>, %arg7: memref<1x4xf32, #tpu.memory_space<vmem>>, %arg8: memref<1x4xf32, #tpu.memory_space<vmem>>, %arg9: memref<1x4xf32, #tpu.memory_space<vmem>>, %arg10: memref<1x4xf32, #tpu.memory_space<vmem>>, %arg11: memref<1x4xf32, #tpu.memory_space<vmem>>, %arg12: memref<1x4xf32, #tpu.memory_space<vmem>>, %arg13: memref<1x8x16x4xf32, #tpu.memory_space<vmem>>) attributes {dimension_semantics = [#tpu.dimension_semantics<parallel>, #tpu.dimension_semantics<parallel>], iteration_bounds = array<i64: 2, 2>, scalar_prefetch = 0 : i64, scratch_operands = 0 : i64, tpu.core_type = #tpu.core_type<tc>, window_params = [{transform_indices = @transform_0, window_bounds = array<i64: 1, 8, 16, 36>}, {transform_indices = @transform_1, window_bounds = array<i64: 1, 8, 16, 36>}, {pipeline_mode = #tpu.pipeline_mode<synchronous>, transform_indices = @transform_2, window_bounds = array<i64: 36, 4>}, {pipeline_mode = #tpu.pipeline_mode<synchronous>, transform_indices = @transform_3, window_bounds = array<i64: 36, 4>}, {pipeline_mode = #tpu.pipeline_mode<synchronous>, transform_indices = @transform_4, window_bounds = array<i64: 36, 4>}, {pipeline_mode = #tpu.pipeline_mode<synchronous>, transform_indices = @transform_5, window_bounds = array<i64: 1, 4>}, {pipeline_mode = #tpu.pipeline_mode<synchronous>, transform_indices = @transform_6, window_bounds = array<i64: 1, 4>}, {pipeline_mode = #tpu.pipeline_mode<synchronous>, transform_indices = @transform_7, window_bounds = array<i64: 1, 4>}, {pipeline_mode = #tpu.pipeline_mode<synchronous>, transform_indices = @transform_8, window_bounds = array<i64: 1, 4>}, {pipeline_mode = #tpu.pipeline_mode<synchronous>, transform_indices = @transform_9, window_bounds = array<i64: 1, 4>}, {pipeline_mode = #tpu.pipeline_mode<synchronous>, transform_indices = @transform_10, window_bounds = array<i64: 1, 4>}, {transform_indices = @transform_11, window_bounds = array<i64: 1, 8, 16, 4>}]} {
    %c0 = arith.constant 0 : index
    %c0_0 = arith.constant 0 : index
    %c0_1 = arith.constant 0 : index
    %c0_2 = arith.constant 0 : index
    %0 = vector.load %arg2[%c0, %c0_0, %c0_1, %c0_2] : memref<1x8x16x36xf32, #tpu.memory_space<vmem>>, vector<1x8x16x36xf32>
    %1 = vector.shape_cast %0 : vector<1x8x16x36xf32> to vector<8x16x36xf32>
    %2 = vector.shape_cast %1 : vector<8x16x36xf32> to vector<128x36xf32>
    %c0_3 = arith.constant 0 : index
    %c0_4 = arith.constant 0 : index
    %c0_5 = arith.constant 0 : index
    %c0_6 = arith.constant 0 : index
    %3 = vector.load %arg3[%c0_3, %c0_4, %c0_5, %c0_6] : memref<1x8x16x36xf32, #tpu.memory_space<vmem>>, vector<1x8x16x36xf32>
    %4 = vector.shape_cast %3 : vector<1x8x16x36xf32> to vector<8x16x36xf32>
    %5 = vector.shape_cast %4 : vector<8x16x36xf32> to vector<128x36xf32>
    %c0_7 = arith.constant 0 : index
    %c0_8 = arith.constant 0 : index
    %6 = vector.load %arg4[%c0_7, %c0_8] : memref<36x4xf32, #tpu.memory_space<vmem>>, vector<36x4xf32>
    %cst = arith.constant dense<0.000000e+00> : vector<128x4xf32>
    %7 = tpu.matmul %2, %6, %cst {dimension_numbers = #tpu.dot_dimension_numbers<[1], [0], [0], [1], [0, 0, 1, 1], [], []>} : vector<128x36xf32>, vector<36x4xf32>, vector<128x4xf32> -> vector<128x4xf32>
    %c0_9 = arith.constant 0 : index
    %c0_10 = arith.constant 0 : index
    %8 = vector.load %arg7[%c0_9, %c0_10] : memref<1x4xf32, #tpu.memory_space<vmem>>, vector<1x4xf32>
    %9 = vector.broadcast %8 : vector<1x4xf32> to vector<128x4xf32>
    %10 = arith.mulf %7, %9 : vector<128x4xf32>
    %c0_11 = arith.constant 0 : index
    %c0_12 = arith.constant 0 : index
    %11 = vector.load %arg8[%c0_11, %c0_12] : memref<1x4xf32, #tpu.memory_space<vmem>>, vector<1x4xf32>
    %12 = vector.broadcast %11 : vector<1x4xf32> to vector<128x4xf32>
    %13 = arith.addf %10, %12 : vector<128x4xf32>
    %cst_13 = arith.constant 0.000000e+00 : f32
    %14 = vector.broadcast %cst_13 : f32 to vector<128x4xf32>
    %15 = arith.maximumf %13, %14 : vector<128x4xf32>
    %c0_14 = arith.constant 0 : index
    %c0_15 = arith.constant 0 : index
    %16 = vector.load %arg5[%c0_14, %c0_15] : memref<36x4xf32, #tpu.memory_space<vmem>>, vector<36x4xf32>
    %cst_16 = arith.constant dense<0.000000e+00> : vector<128x4xf32>
    %17 = tpu.matmul %5, %16, %cst_16 {dimension_numbers = #tpu.dot_dimension_numbers<[1], [0], [0], [1], [0, 0, 1, 1], [], []>} : vector<128x36xf32>, vector<36x4xf32>, vector<128x4xf32> -> vector<128x4xf32>
    %c0_17 = arith.constant 0 : index
    %c0_18 = arith.constant 0 : index
    %18 = vector.load %arg9[%c0_17, %c0_18] : memref<1x4xf32, #tpu.memory_space<vmem>>, vector<1x4xf32>
    %19 = vector.broadcast %18 : vector<1x4xf32> to vector<128x4xf32>
    %20 = arith.mulf %17, %19 : vector<128x4xf32>
    %c0_19 = arith.constant 0 : index
    %c0_20 = arith.constant 0 : index
    %21 = vector.load %arg10[%c0_19, %c0_20] : memref<1x4xf32, #tpu.memory_space<vmem>>, vector<1x4xf32>
    %22 = vector.broadcast %21 : vector<1x4xf32> to vector<128x4xf32>
    %23 = arith.addf %20, %22 : vector<128x4xf32>
    %cst_21 = arith.constant 0.000000e+00 : f32
    %24 = vector.broadcast %cst_21 : f32 to vector<128x4xf32>
    %25 = arith.maximumf %23, %24 : vector<128x4xf32>
    %c0_22 = arith.constant 0 : index
    %c0_23 = arith.constant 0 : index
    %26 = vector.load %arg6[%c0_22, %c0_23] : memref<36x4xf32, #tpu.memory_space<vmem>>, vector<36x4xf32>
    %cst_24 = arith.constant dense<0.000000e+00> : vector<128x4xf32>
    %27 = tpu.matmul %5, %26, %cst_24 {dimension_numbers = #tpu.dot_dimension_numbers<[1], [0], [0], [1], [0, 0, 1, 1], [], []>} : vector<128x36xf32>, vector<36x4xf32>, vector<128x4xf32> -> vector<128x4xf32>
    %c0_25 = arith.constant 0 : index
    %c0_26 = arith.constant 0 : index
    %28 = vector.load %arg11[%c0_25, %c0_26] : memref<1x4xf32, #tpu.memory_space<vmem>>, vector<1x4xf32>
    %29 = vector.broadcast %28 : vector<1x4xf32> to vector<128x4xf32>
    %30 = arith.mulf %27, %29 : vector<128x4xf32>
    %c0_27 = arith.constant 0 : index
    %c0_28 = arith.constant 0 : index
    %31 = vector.load %arg12[%c0_27, %c0_28] : memref<1x4xf32, #tpu.memory_space<vmem>>, vector<1x4xf32>
    %32 = vector.broadcast %31 : vector<1x4xf32> to vector<128x4xf32>
    %33 = arith.addf %30, %32 : vector<128x4xf32>
    %cst_29 = arith.constant 0.000000e+00 : f32
    %34 = vector.broadcast %cst_29 : f32 to vector<128x4xf32>
    %35 = arith.maximumf %33, %34 : vector<128x4xf32>
    %36 = vector.shape_cast %15 : vector<128x4xf32> to vector<8x16x4xf32>
    %37 = tpu.transpose %36, [0, 2, 1] : vector<8x16x4xf32> -> vector<8x4x16xf32>
    %38 = vector.shape_cast %25 : vector<128x4xf32> to vector<8x16x4xf32>
    %39 = tpu.transpose %38, [0, 2, 1] : vector<8x16x4xf32> -> vector<8x4x16xf32>
    %40 = vector.shape_cast %35 : vector<128x4xf32> to vector<8x16x4xf32>
    %41 = tpu.transpose %40, [0, 2, 1] : vector<8x16x4xf32> -> vector<8x4x16xf32>
    "tpu.trace_start"() <{level = 10 : i32, message = "hlw,hsw->hls"}> : () -> ()
    %cst_30 = arith.constant dense<0.000000e+00> : vector<8x4x4xf32>
    %42 = tpu.matmul %37, %39, %cst_30 {dimension_numbers = #tpu.dot_dimension_numbers<[2], [2], [1], [1], [0, 0, 0, 1, 1, 1], [0], [0]>} : vector<8x4x16xf32>, vector<8x4x16xf32>, vector<8x4x4xf32> -> vector<8x4x4xf32>
    "tpu.trace_stop"() : () -> ()
    %cst_31 = arith.constant 2.500000e-01 : f32
    %43 = vector.broadcast %cst_31 : f32 to vector<8x4x4xf32>
    %44 = arith.mulf %42, %43 : vector<8x4x4xf32>
    %cst_32 = arith.constant dense<0xFF800000> : vector<8x4xf32>
    %45 = vector.multi_reduction <maximumf>, %44, %cst_32 [2] : vector<8x4x4xf32> to vector<8x4xf32>
    %46 = vector.shape_cast %45 : vector<8x4xf32> to vector<8x4x1xf32>
    %47 = vector.broadcast %46 : vector<8x4x1xf32> to vector<8x4x4xf32>
    %48 = arith.subf %44, %47 : vector<8x4x4xf32>
    %49 = math.exp %48 : vector<8x4x4xf32>
    %cst_33 = arith.constant dense<0.000000e+00> : vector<8x4xf32>
    %50 = vector.multi_reduction <add>, %49, %cst_33 [2] : vector<8x4x4xf32> to vector<8x4xf32>
    %51 = vector.shape_cast %50 : vector<8x4xf32> to vector<8x4x1xf32>
    %52 = vector.broadcast %51 : vector<8x4x1xf32> to vector<8x4x4xf32>
    %53 = arith.divf %49, %52 : vector<8x4x4xf32>
    "tpu.trace_start"() <{level = 10 : i32, message = "hls,hsw->hlw"}> : () -> ()
    %cst_34 = arith.constant dense<0.000000e+00> : vector<8x4x16xf32>
    %54 = tpu.matmul %53, %41, %cst_34 {dimension_numbers = #tpu.dot_dimension_numbers<[2], [1], [1], [2], [0, 0, 0, 1, 1, 2], [0], [0]>} : vector<8x4x4xf32>, vector<8x4x16xf32>, vector<8x4x16xf32> -> vector<8x4x16xf32>
    "tpu.trace_stop"() : () -> ()
    %55 = tpu.transpose %54, [0, 2, 1] : vector<8x4x16xf32> -> vector<8x16x4xf32>
    %c0_35 = arith.constant 0 : index
    %c0_36 = arith.constant 0 : index
    %c0_37 = arith.constant 0 : index
    %c0_38 = arith.constant 0 : index
    %56 = vector.load %arg13[%c0_35, %c0_36, %c0_37, %c0_38] : memref<1x8x16x4xf32, #tpu.memory_space<vmem>>, vector<1x8x16x4xf32>
    %57 = vector.shape_cast %56 : vector<1x8x16x4xf32> to vector<8x16x4xf32>
    %58 = vector.shape_cast %55 : vector<8x16x4xf32> to vector<1x8x16x4xf32>
    tpu.vector_store %arg13[%c0_35, %c0_36, %c0_37, %c0_38], %58 {strides = array<i32>} : memref<1x8x16x4xf32, #tpu.memory_space<vmem>>, vector<1x8x16x4xf32>,
    return
  }
  func.func @transform_0(%arg0: i32, %arg1: i32) -> (i32, i32, i32, i32) {
    %c0_i32 = arith.constant 0 : i32
    %c0_i32_0 = arith.constant 0 : i32
    %c0_i32_1 = arith.constant 0 : i32
    return %arg0, %arg1, %c0_i32, %c0_i32_0 : i32, i32, i32, i32
  }
  func.func @transform_1(%arg0: i32, %arg1: i32) -> (i32, i32, i32, i32) {
    %c0_i32 = arith.constant 0 : i32
    %c0_i32_0 = arith.constant 0 : i32
    %c0_i32_1 = arith.constant 0 : i32
    return %arg0, %arg1, %c0_i32, %c0_i32_0 : i32, i32, i32, i32
  }
  func.func @transform_2(%arg0: i32, %arg1: i32) -> (i32, i32) {
    %c0_i32 = arith.constant 0 : i32
    %c0_i32_0 = arith.constant 0 : i32
    %c0_i32_1 = arith.constant 0 : i32
    return %c0_i32, %c0_i32_0 : i32, i32
  }
  func.func @transform_3(%arg0: i32, %arg1: i32) -> (i32, i32) {
    %c0_i32 = arith.constant 0 : i32
    %c0_i32_0 = arith.constant 0 : i32
    %c0_i32_1 = arith.constant 0 : i32
    return %c0_i32, %c0_i32_0 : i32, i32
  }
  func.func @transform_4(%arg0: i32, %arg1: i32) -> (i32, i32) {
    %c0_i32 = arith.constant 0 : i32
    %c0_i32_0 = arith.constant 0 : i32
    %c0_i32_1 = arith.constant 0 : i32
    return %c0_i32, %c0_i32_0 : i32, i32
  }
  func.func @transform_5(%arg0: i32, %arg1: i32) -> (i32, i32) {
    %c0_i32 = arith.constant 0 : i32
    %c0_i32_0 = arith.constant 0 : i32
    %c0_i32_1 = arith.constant 0 : i32
    return %c0_i32, %c0_i32_0 : i32, i32
  }
  func.func @transform_6(%arg0: i32, %arg1: i32) -> (i32, i32) {
    %c0_i32 = arith.constant 0 : i32
    %c0_i32_0 = arith.constant 0 : i32
    %c0_i32_1 = arith.constant 0 : i32
    return %c0_i32, %c0_i32_0 : i32, i32
  }
  func.func @transform_7(%arg0: i32, %arg1: i32) -> (i32, i32) {
    %c0_i32 = arith.constant 0 : i32
    %c0_i32_0 = arith.constant 0 : i32
    %c0_i32_1 = arith.constant 0 : i32
    return %c0_i32, %c0_i32_0 : i32, i32
  }
  func.func @transform_8(%arg0: i32, %arg1: i32) -> (i32, i32) {
    %c0_i32 = arith.constant 0 : i32
    %c0_i32_0 = arith.constant 0 : i32
    %c0_i32_1 = arith.constant 0 : i32
    return %c0_i32, %c0_i32_0 : i32, i32
  }
  func.func @transform_9(%arg0: i32, %arg1: i32) -> (i32, i32) {
    %c0_i32 = arith.constant 0 : i32
    %c0_i32_0 = arith.constant 0 : i32
    %c0_i32_1 = arith.constant 0 : i32
    return %c0_i32, %c0_i32_0 : i32, i32
  }
  func.func @transform_10(%arg0: i32, %arg1: i32) -> (i32, i32) {
    %c0_i32 = arith.constant 0 : i32
    %c0_i32_0 = arith.constant 0 : i32
    %c0_i32_1 = arith.constant 0 : i32
    return %c0_i32, %c0_i32_0 : i32, i32
  }
  func.func @transform_11(%arg0: i32, %arg1: i32) -> (i32, i32, i32, i32) {
    %c0_i32 = arith.constant 0 : i32
    %c0_i32_0 = arith.constant 0 : i32
    %c0_i32_1 = arith.constant 0 : i32
    return %arg0, %arg1, %c0_i32, %c0_i32_0 : i32, i32, i32, i32
  }
}

module attributes {stable_mosaic.version = 11 : i64} {
  func.func @_mlp_kernel(%arg0: i32, %arg1: i32, %arg2: memref<1x8x16x72xf32, #tpu.memory_space<vmem>>, %arg3: memref<1x8x16x4xf32, #tpu.memory_space<vmem>>, %arg4: memref<72x4xf32, #tpu.memory_space<vmem>>, %arg5: memref<1x4xf32, #tpu.memory_space<vmem>>, %arg6: memref<1x4xf32, #tpu.memory_space<vmem>>, %arg7: memref<1x8x16x4xf32, #tpu.memory_space<vmem>>) attributes {dimension_semantics = [#tpu.dimension_semantics<parallel>, #tpu.dimension_semantics<parallel>], iteration_bounds = array<i64: 2, 2>, scalar_prefetch = 0 : i64, scratch_operands = 0 : i64, tpu.core_type = #tpu.core_type<tc>, window_params = [{transform_indices = @transform_0, window_bounds = array<i64: 1, 8, 16, 72>}, {transform_indices = @transform_1, window_bounds = array<i64: 1, 8, 16, 4>}, {pipeline_mode = #tpu.pipeline_mode<synchronous>, transform_indices = @transform_2, window_bounds = array<i64: 72, 4>}, {pipeline_mode = #tpu.pipeline_mode<synchronous>, transform_indices = @transform_3, window_bounds = array<i64: 1, 4>}, {pipeline_mode = #tpu.pipeline_mode<synchronous>, transform_indices = @transform_4, window_bounds = array<i64: 1, 4>}, {transform_indices = @transform_5, window_bounds = array<i64: 1, 8, 16, 4>}]} {
    %c0 = arith.constant 0 : index
    %c0_0 = arith.constant 0 : index
    %c0_1 = arith.constant 0 : index
    %c0_2 = arith.constant 0 : index
    %0 = vector.load %arg2[%c0, %c0_0, %c0_1, %c0_2] : memref<1x8x16x72xf32, #tpu.memory_space<vmem>>, vector<1x8x16x72xf32>
    %1 = vector.shape_cast %0 : vector<1x8x16x72xf32> to vector<8x16x72xf32>
    %2 = vector.shape_cast %1 : vector<8x16x72xf32> to vector<128x72xf32>
    %c0_3 = arith.constant 0 : index
    %c0_4 = arith.constant 0 : index
    %3 = vector.load %arg4[%c0_3, %c0_4] : memref<72x4xf32, #tpu.memory_space<vmem>>, vector<72x4xf32>
    %cst = arith.constant dense<0.000000e+00> : vector<128x4xf32>
    %4 = tpu.matmul %2, %3, %cst {dimension_numbers = #tpu.dot_dimension_numbers<[1], [0], [0], [1], [0, 0, 1, 1], [], []>} : vector<128x72xf32>, vector<72x4xf32>, vector<128x4xf32> -> vector<128x4xf32>
    %c0_5 = arith.constant 0 : index
    %c0_6 = arith.constant 0 : index
    %5 = vector.load %arg5[%c0_5, %c0_6] : memref<1x4xf32, #tpu.memory_space<vmem>>, vector<1x4xf32>
    %6 = vector.broadcast %5 : vector<1x4xf32> to vector<128x4xf32>
    %7 = arith.mulf %4, %6 : vector<128x4xf32>
    %c0_7 = arith.constant 0 : index
    %c0_8 = arith.constant 0 : index
    %8 = vector.load %arg6[%c0_7, %c0_8] : memref<1x4xf32, #tpu.memory_space<vmem>>, vector<1x4xf32>
    %9 = vector.broadcast %8 : vector<1x4xf32> to vector<128x4xf32>
    %10 = arith.addf %7, %9 : vector<128x4xf32>
    %cst_9 = arith.constant 0.000000e+00 : f32
    %11 = vector.broadcast %cst_9 : f32 to vector<128x4xf32>
    %12 = arith.maximumf %10, %11 : vector<128x4xf32>
    %c0_10 = arith.constant 0 : index
    %c0_11 = arith.constant 0 : index
    %c0_12 = arith.constant 0 : index
    %c0_13 = arith.constant 0 : index
    %13 = vector.load %arg3[%c0_10, %c0_11, %c0_12, %c0_13] : memref<1x8x16x4xf32, #tpu.memory_space<vmem>>, vector<1x8x16x4xf32>
    %14 = vector.shape_cast %13 : vector<1x8x16x4xf32> to vector<8x16x4xf32>
    %15 = vector.shape_cast %12 : vector<128x4xf32> to vector<8x16x4xf32>
    %16 = arith.addf %14, %15 : vector<8x16x4xf32>
    %c0_14 = arith.constant 0 : index
    %c0_15 = arith.constant 0 : index
    %c0_16 = arith.constant 0 : index
    %c0_17 = arith.constant 0 : index
    %17 = vector.load %arg7[%c0_14, %c0_15, %c0_16, %c0_17] : memref<1x8x16x4xf32, #tpu.memory_space<vmem>>, vector<1x8x16x4xf32>
    %18 = vector.shape_cast %17 : vector<1x8x16x4xf32> to vector<8x16x4xf32>
    %19 = vector.shape_cast %16 : vector<8x16x4xf32> to vector<1x8x16x4xf32>
    tpu.vector_store %arg7[%c0_14, %c0_15, %c0_16, %c0_17], %19 {strides = array<i32>} : memref<1x8x16x4xf32, #tpu.memory_space<vmem>>, vector<1x8x16x4xf32>,
    return
  }
  func.func @transform_0(%arg0: i32, %arg1: i32) -> (i32, i32, i32, i32) {
    %c0_i32 = arith.constant 0 : i32
    %c0_i32_0 = arith.constant 0 : i32
    %c0_i32_1 = arith.constant 0 : i32
    return %arg0, %arg1, %c0_i32, %c0_i32_0 : i32, i32, i32, i32
  }
  func.func @transform_1(%arg0: i32, %arg1: i32) -> (i32, i32, i32, i32) {
    %c0_i32 = arith.constant 0 : i32
    %c0_i32_0 = arith.constant 0 : i32
    %c0_i32_1 = arith.constant 0 : i32
    return %arg0, %arg1, %c0_i32, %c0_i32_0 : i32, i32, i32, i32
  }
  func.func @transform_2(%arg0: i32, %arg1: i32) -> (i32, i32) {
    %c0_i32 = arith.constant 0 : i32
    %c0_i32_0 = arith.constant 0 : i32
    %c0_i32_1 = arith.constant 0 : i32
    return %c0_i32, %c0_i32_0 : i32, i32
  }
  func.func @transform_3(%arg0: i32, %arg1: i32) -> (i32, i32) {
    %c0_i32 = arith.constant 0 : i32
    %c0_i32_0 = arith.constant 0 : i32
    %c0_i32_1 = arith.constant 0 : i32
    return %c0_i32, %c0_i32_0 : i32, i32
  }
  func.func @transform_4(%arg0: i32, %arg1: i32) -> (i32, i32) {
    %c0_i32 = arith.constant 0 : i32
    %c0_i32_0 = arith.constant 0 : i32
    %c0_i32_1 = arith.constant 0 : i32
    return %c0_i32, %c0_i32_0 : i32, i32
  }
  func.func @transform_5(%arg0: i32, %arg1: i32) -> (i32, i32, i32, i32) {
    %c0_i32 = arith.constant 0 : i32
    %c0_i32_0 = arith.constant 0 : i32
    %c0_i32_1 = arith.constant 0 : i32
    return %arg0, %arg1, %c0_i32, %c0_i32_0 : i32, i32, i32, i32
  }
}

</mosaic_0001>

<bundles_post_ra>
// kernel: cross_transformer_forward.2
= control target key start
LH: loop header
LB: loop body
LE: loop exit
PB: predicated region body
PF: predicated region fallthrough
CT: control target
= control target key end

     0   :  { %s2535_s17 = smov 0   ;;  %s2537_s18 = smov 0   ;;  %s3042_s0 = inlined_call_operand.vmem [shape: f32[2,16,16,36], index: 0, kind: input, shape index: {}]   ;;  %s3043_s1 = inlined_call_operand.vmem [shape: f32[2,16,16,36], index: 1, kind: input, shape index: {}]   ;;  %s3044_s2 = inlined_call_operand.vmem [shape: f32[36,4], index: 2, kind: input, shape index: {}]   ;;  %s3045_s3 = inlined_call_operand.vmem [shape: f32[36,4], index: 3, kind: input, shape index: {}]   ;;  %s3046_s4 = inlined_call_operand.vmem [shape: f32[36,4], index: 4, kind: input, shape index: {}]   ;;  %s3047_s5 = inlined_call_operand.vmem [shape: f32[1,4], index: 5, kind: input, shape index: {}]   ;;  %s3048_s6 = inlined_call_operand.vmem [shape: f32[1,4], index: 6, kind: input, shape index: {}]   ;;  %s3049_s7 = inlined_call_operand.vmem [shape: f32[1,4], index: 7, kind: input, shape index: {}]   ;;  %s3050_s8 = inlined_call_operand.vmem [shape: f32[1,4], index: 8, kind: input, shape index: {}]   ;;  %s3051_s9 = inlined_call_operand.vmem [shape: f32[1,4], index: 9, kind: input, shape index: {}]   ;;  %s3052_s10 = inlined_call_operand.vmem [shape: f32[1,4], index: 10, kind: input, shape index: {}]   ;;  %s3053_s11 = inlined_call_operand.vmem [shape: f32[2,16,16,4], index: 11, kind: output, shape index: {}]  }
   0x1   :  { %s2539_s19 = smov 0   ;;  %s2541_s20 = smov 0  }
   0x2   :  { %s2543_s21 = smov 0  }
   0x3 LB: > { %s30_s22 = sadd.s32 1, %s2465_s19  ;;  %s33_s23 = sadd.s32 1, %s2469_s20  ;;  %s2473_s21 = sphi %s2543_s21, %s21_s21   ;;  %s2469_s20 = sphi %s2541_s20, %s3057_s20   ;;  %s2465_s19 = sphi %s2539_s19, %s3056_s19   ;;  %s2461_s18 = sphi %s2537_s18, %s3055_s18   ;;  %s2457_s17 = sphi %s2535_s17, %s3054_s17  }
   0x4   : > { %p31_p0 = scmp.ge.s32.totalorder %s30_s22, 2  ;;  %p2258_p1 = scmp.ge.s32.totalorder %s2473_s21, 1 }
   0x5   : > { %p377_p2 = scmp.lt.s32.totalorder %s2473_s21, 5 }
   0x6   : > { %s3059_s22 = smov (%p31_p0, %s30_s22), 0  ;;  %s3061_s23 = smov (!%p31_p0, %s33_s23), %s2469_s20 }
   0x7   : > { %p378_p3 = pnand %p2258_p1, %p377_p2  ;;  %p35_p4 = scmp.ge.s32.totalorder %s3061_s23, 2 }
   0x8   : > { %s2259_s28 = sshll.u32 (!%p378_p3), %s2457_s17, 3  ;;  %p438_p5 = scmp.lt.s32.totalorder (!%p378_p3), %s2461_s18, 1 }
   0x9   : > { %s3063_s23 = smov (%p35_p4, %s3061_s23), 0  ;;  %381 = sbr.rel (%p378_p3) target bundleno = 1126 (0x466), region = 64 }
   0xa   : > { %p440_p6 = scmp.lt.s32.totalorder (!%p378_p3), %s2259_s28, 15 }
   0xe   : > { %v506_v0 = vld [vmem:[%s3044_s2 + $0x20] sm:$0xf]  ;;  %vm556_vm0 = vcmask 1043456   ;;  %v505_v1 = vld [vmem:[%s3044_s2 + $0x18] sm:$0xff]  ;;  %v504_v2 = vld [vmem:[%s3044_s2 + $0x10] sm:$0xff]  ;;  %s3065_s18 = smov (!%p438_p5, %s2461_s18), 1 }
   0xf   : > { %2271 = vmatpush.msk.msra.mxu0 %vm556_vm0, %v506_v0  ;;  %v503_v3 = vld [vmem:[%s3044_s2 + $0x8] sm:$0xff]  ;;  %s3067_s28 = smov (!%p440_p6, %s2259_s28), 15  ;;  %s2261_s14 = sshll.u32 %s3065_s18, 5  ;;  %v502_v4 = vld [vmem:[%s3044_s2] sm:$0xff]  ;;  %vm507_vm1 = vcmask 293888   ;;  %v684_v19 = vld [vmem:[%s3045_s3 + $0x18] sm:$0xff] }
  0x10   : > { %s2260_s17 = sshll.u32 %s3067_s28, 1  ;;  %v685_v18 = vld [vmem:[%s3045_s3 + $0x20] sm:$0xf]  ;;  %v683_v21 = vld [vmem:[%s3045_s3 + $0x10] sm:$0xff]  ;;  %v682_v22 = vld [vmem:[%s3045_s3 + $0x8] sm:$0xff]  ;;  %vm1243_vm2 = vcmask 130048  }
  0x11   : > { %572 = vmatpush.msra.mxu0 %v505_v1  ;;  %s444_s24 = sadd.s32 %s2261_s14, %s2260_s17  ;;  %2288 = vmatpush.msk.msra.mxu1 %vm556_vm0, %v685_v18  ;;  %v681_v23 = vld [vmem:[%s3045_s3] sm:$0xff]  ;;  %vm1436_vm3 = vcmask 27648   ;;  %vm1629_vm4 = vcmask 31744  }
  0x12   : > { %s2581_s25 = sshll.u32 %s444_s24, 3  ;;  %v2659_v29 = vld [vmem:[%s3047_s5] ss:$0 sm:$0xff] }
  0x13   : > { %573 = vmatpush.msra.mxu0 %v504_v2  ;;  %s2587_s29 = scalar_lea.vmem %s3042_s0, %s2581_s25  ;;  %749 = vmatpush.msra.mxu1 %v684_v19  ;;  %s2633_s26 = scalar_lea.vmem %s3043_s1, %s2581_s25  ;;  %v2664_v30 = vld [vmem:[%s3048_s6] ss:$0 sm:$0xff] }
  0x14   : > { %v470_v5 = vld [vmem:[%s2587_s29] sm:$0xff]  ;;  %v471_v6 = vld [vmem:[%s2587_s29 + $0x8] sm:$0xff]  ;;  %v472_v7 = vld [vmem:[%s2587_s29 + $0x10] sm:$0xff]  ;;  %s2993_s27 = scalar_lea.vmem %s3053_s11, %s2581_s25 }
  0x15   : > { %574 = vmatpush.msra.mxu0 %v503_v3  ;;  %v473_v8 = vld [vmem:[%s2587_s29 + $0x18] sm:$0xff]  ;;  %v474_v9 = vld [vmem:[%s2587_s29 + $0x20] sm:$0xff]  ;;  %v475_v10 = vld [vmem:[%s2587_s29 + $0x28] sm:$0xff]  ;;  %750 = vmatpush.msra.mxu1 %v683_v21 }
  0x16   : > { %v476_v11 = vld [vmem:[%s2587_s29 + $0x30] sm:$0xff]  ;;  %v477_v12 = vld [vmem:[%s2587_s29 + $0x38] sm:$0xff]  ;;  %v478_v13 = vld [vmem:[%s2587_s29 + $0x40] sm:$0xff] }
  0x17   : > { %575 = vmatpush.msra.mxu0 %v502_v4  ;;  %v479_v14 = vld [vmem:[%s2587_s29 + $0x48] sm:$0xff]  ;;  %v480_v15 = vld [vmem:[%s2587_s29 + $0x50] sm:$0xff]  ;;  %v481_v16 = vld [vmem:[%s2587_s29 + $0x58] sm:$0xff]  ;;  %751 = vmatpush.msra.mxu1 %v682_v22 }
  0x18   : > { %2272 = vmatmul.msk.f32.vlgmr.msra.gmra.mxu0 %vm507_vm1, %v470_v5  ;;  %v482_v17 = vld [vmem:[%s2587_s29 + $0x60] sm:$0xff]  ;;  %v483_v20 = vld [vmem:[%s2587_s29 + $0x68] sm:$0xff]  ;;  %v484_v25 = vld [vmem:[%s2587_s29 + $0x70] sm:$0xff] }
  0x19   : > { %v2640_v24 = vld [vmem:[%s2633_s26] sm:$0xff]  ;;  %752 = vmatpush.msra.mxu1 %v681_v23  ;;  %v2647_v26 = vld [vmem:[%s2633_s26 + $0x8] sm:$0xff]  ;;  %v485_v27 = vld [vmem:[%s2587_s29 + $0x78] sm:$0xff] }
  0x1a   : > { %2289 = vmatmul.msk.f32.vlgmr.msra.gmra.mxu1 %vm507_vm1, %v2640_v24  ;;  %v2654_v28 = vld [vmem:[%s2633_s26 + $0x10] sm:$0xff]  ;;  %v2671_v34 = vld [vmem:[%s2633_s26 + $0x18] sm:$0xff]  ;;  %v2678_v39 = vld [vmem:[%s2633_s26 + $0x20] sm:$0xff] }
  0x1b   : > { %v2685_v44 = vld [vmem:[%s2633_s26 + $0x28] sm:$0xff]  ;;  %v2692_v50 = vld [vmem:[%s2633_s26 + $0x30] sm:$0xff]  ;;  %v2699_v54 = vld [vmem:[%s2633_s26 + $0x38] sm:$0xff] }
  0x1c   : > { %v2706_v60 = vld [vmem:[%s2633_s26 + $0x40] sm:$0xff]  ;;  %v2713_v0 = vld [vmem:[%s2633_s26 + $0x48] sm:$0xff] }
  0x20   : > { %2273 = vmatmul.msk.f32.gmra.mxu0 %vm507_vm1, %v471_v6  ;;  %v2720_v6 = vld [vmem:[%s2633_s26 + $0x50] sm:$0xff] }
  0x22   : > { %2290 = vmatmul.msk.f32.gmra.mxu1 %vm507_vm1, %v2647_v26 }
  0x28   : > { %2274 = vmatmul.msk.f32.gmra.mxu0 %vm507_vm1, %v472_v7 }
  0x2a   : > { %2291 = vmatmul.msk.f32.gmra.mxu1 %vm507_vm1, %v2654_v28 }
  0x30   : > { %2275 = vmatmul.msk.f32.gmra.mxu0 %vm507_vm1, %v473_v8 }
  0x32   : > { %2292 = vmatmul.msk.f32.gmra.mxu1 %vm507_vm1, %v2671_v34 }
  0x38   : > { %2276 = vmatmul.msk.f32.gmra.mxu0 %vm507_vm1, %v474_v9 }
  0x3a   : > { %2293 = vmatmul.msk.f32.gmra.mxu1 %vm507_vm1, %v2678_v39 }
  0x40   : > { %2277 = vmatmul.msk.f32.gmra.mxu0 %vm507_vm1, %v475_v10  ;;  %v2727_v10 = vld [vmem:[%s2633_s26 + $0x58] sm:$0xff] }
  0x42   : > { %2294 = vmatmul.msk.f32.gmra.mxu1 %vm507_vm1, %v2685_v44 }
  0x48   : > { %2278 = vmatmul.msk.f32.gmra.mxu0 %vm507_vm1, %v476_v11 }
  0x4a   : > { %2295 = vmatmul.msk.f32.gmra.mxu1 %vm507_vm1, %v2692_v50 }
  0x50   : > { %2279 = vmatmul.msk.f32.gmra.mxu0 %vm507_vm1, %v477_v12 }
  0x52   : > { %2296 = vmatmul.msk.f32.gmra.mxu1 %vm507_vm1, %v2699_v54 }
  0x58   : > { %2280 = vmatmul.msk.f32.gmra.mxu0 %vm507_vm1, %v478_v13 }
  0x5a   : > { %2297 = vmatmul.msk.f32.gmra.mxu1 %vm507_vm1, %v2706_v60 }
  0x60   : > { %2281 = vmatmul.msk.f32.gmra.mxu0 %vm507_vm1, %v479_v14 }
  0x62   : > { %2298 = vmatmul.msk.f32.gmra.mxu1 %vm507_vm1, %v2713_v0 }
  0x68   : > { %2282 = vmatmul.msk.f32.gmra.mxu0 %vm507_vm1, %v480_v15 }
  0x6a   : > { %2299 = vmatmul.msk.f32.gmra.mxu1 %vm507_vm1, %v2720_v6 }
  0x70   : > { %2283 = vmatmul.msk.f32.gmra.mxu0 %vm507_vm1, %v481_v16  ;;  %v2734_v16 = vld [vmem:[%s2633_s26 + $0x60] sm:$0xff] }
  0x72   : > { %2300 = vmatmul.msk.f32.gmra.mxu1 %vm507_vm1, %v2727_v10 }
  0x78   : > { %2284 = vmatmul.msk.f32.gmra.mxu0 %vm507_vm1, %v482_v17 }
  0x7a   : > { %2301 = vmatmul.msk.f32.gmra.mxu1 %vm507_vm1, %v2734_v16 }
  0x80   : > { %2285 = vmatmul.msk.f32.gmra.mxu0 %vm507_vm1, %v483_v20  ;;  %v2741_v20 = vld [vmem:[%s2633_s26 + $0x68] sm:$0xff] }
  0x82   : > { %2302 = vmatmul.msk.f32.gmra.mxu1 %vm507_vm1, %v2741_v20 }
  0x88   : > { %2286 = vmatmul.msk.f32.gmra.mxu0 %vm507_vm1, %v484_v25 }
  0x90   : > { %2287 = vmatmul.msk.f32.gmra.mxu0 %vm507_vm1, %v485_v27 }
  0x95   : > { %v577_v31 = vpop.f32.mrf.mxu0 }
  0x96   : > { %v629_v32 = vmul.f32 %v2659_v29, %v577_v31  ;;  %v2748_v31 = vld [vmem:[%s2633_s26 + $0x70] sm:$0xff] }
  0x97   : > { %2303 = vmatmul.msk.f32.gmra.mxu1 %vm507_vm1, %v2748_v31 }
  0x98   : > { %v649_v33 = vadd.f32 %v2664_v30, %v629_v32 }
  0x9a   : > { %v665_v35 = vmax.f32 %v649_v33, 0.0 }
  0x9c   : > { %987 = vxpose.xlu0.b32.start [1/2] (short) (narrow) %v665_v35, 8 }
  0x9d   : > { %v580_v36 = vpop.f32.mrf.mxu0 }
  0x9e   : > { %v630_v37 = vmul.f32 %v2659_v29, %v580_v36  ;;  %v2755_v36 = vld [vmem:[%s2633_s26 + $0x78] sm:$0xff] }
  0x9f   : > { %2304 = vmatmul.msk.f32.gmra.mxu1 %vm507_vm1, %v2755_v36 }
  0xa0   : > { %v650_v38 = vadd.f32 %v2664_v30, %v630_v37 }
  0xa2   : > { %v666_v40 = vmax.f32 %v650_v38, 0.0 }
  0xa4   : > { %988 = vxpose.xlu0.b32.end [2/2] (short) (narrow) %v666_v40, 8 }
  0xa5   : > { %v583_v41 = vpop.f32.mrf.mxu0 }
  0xa6   : > { %v631_v42 = vmul.f32 %v2659_v29, %v583_v41 }
  0xa8   : > { %v651_v43 = vadd.f32 %v2664_v30, %v631_v42  ;;  %v754_v42 = vpop.f32.mrf.mxu1 }
  0xaa   : > { %v667_v45 = vmax.f32 %v651_v43, 0.0 }
  0xac   : > { %1019 = vxpose.xlu1.b32.start [1/2] (short) (narrow) %v667_v45, 8  ;;  %v2764_v45 = vld [vmem:[%s3049_s7] ss:$0 sm:$0xff] }
  0xad   : > { %v586_v46 = vpop.f32.mrf.mxu0 }
  0xae   : > { %v632_v47 = vmul.f32 %v2659_v29, %v586_v46 }
  0xb0   : > { %v652_v48 = vadd.f32 %v2664_v30, %v632_v47 }
  0xb2   : > { %v668_v49 = vmax.f32 %v652_v48, 0.0  ;;  %v806_v48 = vmul.f32 %v2764_v45, %v754_v42 }
  0xb4   : > { %1020 = vxpose.xlu1.b32.end [2/2] (short) (narrow) %v668_v49, 8 }
  0xb5   : > { %v589_v51 = vpop.f32.mrf.mxu0 }
  0xb6   : > { %v633_v52 = vmul.f32 %v2659_v29, %v589_v51  ;;  %v2772_v51 = vld [vmem:[%s3050_s8] ss:$0 sm:$0xff] }
  0xb8   : > { %v653_v53 = vadd.f32 %v2664_v30, %v633_v52  ;;  %v757_v52 = vpop.f32.mrf.mxu1 }
  0xba   : > { %v669_v55 = vmax.f32 %v653_v53, 0.0 }
  0xbc   : > { %1051 = vxpose.xlu2.b32.start [1/2] (short) (narrow) %v669_v55, 8  ;;  %v807_v55 = vmul.f32 %v2764_v45, %v757_v52 }
  0xbd   : > { %v592_v56 = vpop.f32.mrf.mxu0 }
  0xbe   : > { %v634_v57 = vmul.f32 %v2659_v29, %v592_v56  ;;  %v826_v56 = vadd.f32 %v2772_v51, %v806_v48 }
  0xc0   : > { %v654_v58 = vadd.f32 %v2664_v30, %v634_v57  ;;  %v827_v57 = vadd.f32 %v2772_v51, %v807_v55 }
  0xc2   : > { %v670_v59 = vmax.f32 %v654_v58, 0.0 }
  0xc4   : > { %1052 = vxpose.xlu2.b32.end [2/2] (short) (narrow) %v670_v59, 8 }
  0xc5   : > { %v595_v61 = vpop.f32.mrf.mxu0 }
  0xc6   : > { %v635_v62 = vmul.f32 %v2659_v29, %v595_v61  ;;  %v843_v61 = vmax.f32 %v827_v57, 0.0 }
  0xc8   : > { %v655_v63 = vadd.f32 %v2664_v30, %v635_v62  ;;  %v842_v62 = vmax.f32 %v826_v56, 0.0  ;;  %1261 = vmatpush.msra.mxu3 %v843_v61 }
  0xca   : > { %v671_v1 = vmax.f32 %v655_v63, 0.0  ;;  %1262 = vmatpush.msra.mxu3 %v842_v62 }
  0xcc   : > { %1083 = vxpose.xlu0.b32.start [1/2] (short) (narrow) %v671_v1, 8  ;;  %v760_v1 = vpop.f32.mrf.mxu1 }
  0xcd   : > { %v598_v2 = vpop.f32.mrf.mxu0 }
  0xce   : > { %v636_v3 = vmul.f32 %v2659_v29, %v598_v2 }
  0xd0   : > { %v656_v4 = vadd.f32 %v2664_v30, %v636_v3 }
  0xd2   : > { %v672_v5 = vmax.f32 %v656_v4, 0.0 }
  0xd4   : > { %1084 = vxpose.xlu0.b32.end [2/2] (short) (narrow) %v672_v5, 8  ;;  %v763_v3 = vpop.f32.mrf.mxu1 }
  0xd5   : > { %v601_v7 = vpop.f32.mrf.mxu0  ;;  %v809_v4 = vmul.f32 %v2764_v45, %v763_v3 }
  0xd6   : > { %v637_v8 = vmul.f32 %v2659_v29, %v601_v7  ;;  %v808_v7 = vmul.f32 %v2764_v45, %v760_v1 }
  0xd7   : > { %v829_v5 = vadd.f32 %v2772_v51, %v809_v4 }
  0xd8   : > { %v657_v9 = vadd.f32 %v2664_v30, %v637_v8 }
  0xd9   : > { %v845_v8 = vmax.f32 %v829_v5, 0.0 }
  0xda   : > { %v673_v11 = vmax.f32 %v657_v9, 0.0 }
  0xdb   : > { %1284 = vmatpush.msrb.mxu3 %v845_v8 }
  0xdc   : > { %1115 = vxpose.xlu1.b32.start [1/2] (short) (narrow) %v673_v11, 8  ;;  %v766_v9 = vpop.f32.mrf.mxu1 }
  0xdd   : > { %v604_v12 = vpop.f32.mrf.mxu0 }
  0xde   : > { %v638_v13 = vmul.f32 %v2659_v29, %v604_v12 }
  0xe0   : > { %v658_v14 = vadd.f32 %v2664_v30, %v638_v13 }
  0xe2   : > { %v674_v15 = vmax.f32 %v658_v14, 0.0  ;;  %v810_v14 = vmul.f32 %v2764_v45, %v766_v9 }
  0xe4   : > { %1116 = vxpose.xlu1.b32.end [2/2] (short) (narrow) %v674_v15, 8 }
  0xe5   : > { %v607_v17 = vpop.f32.mrf.mxu0 }
  0xe6   : > { %v639_v18 = vmul.f32 %v2659_v29, %v607_v17 }
  0xe8   : > { %v659_v19 = vadd.f32 %v2664_v30, %v639_v18  ;;  %v830_v18 = vadd.f32 %v2772_v51, %v810_v14 }
  0xea   : > { %v675_v21 = vmax.f32 %v659_v19, 0.0 }
  0xec   : > { %1147 = vxpose.xlu2.b32.start [1/2] (short) (narrow) %v675_v21, 8  ;;  %v846_v21 = vmax.f32 %v830_v18, 0.0 }
  0xed   : > { %v610_v22 = vpop.f32.mrf.mxu0 }
  0xee   : > { %v640_v23 = vmul.f32 %v2659_v29, %v610_v22 }
  0xf0   : > { %v660_v25 = vadd.f32 %v2664_v30, %v640_v23 }
  0xf2   : > { %v676_v27 = vmax.f32 %v660_v25, 0.0 }
  0xf4   : > { %1148 = vxpose.xlu2.b32.end [2/2] (short) (narrow) %v676_v27, 8 }
  0xf5   : > { %v613_v32 = vpop.f32.mrf.mxu0 }
  0xf6   : > { %v641_v33 = vmul.f32 %v2659_v29, %v613_v32 }
  0xf8   : > { %v661_v35 = vadd.f32 %v2664_v30, %v641_v33 }
  0xfa   : > { %v677_v37 = vmax.f32 %v661_v35, 0.0 }
  0xfc   : > { %1179 = vxpose.xlu0.b32.start [1/2] (short) (narrow) %v677_v37, 8 }
  0xfd   : > { %v616_v38 = vpop.f32.mrf.mxu0 }
  0xfe   : > { %v642_v40 = vmul.f32 %v2659_v29, %v616_v38 }
 0x100   : > { %v662_v41 = vadd.f32 %v2664_v30, %v642_v40 }
 0x102   : > { %v678_v43 = vmax.f32 %v662_v41, 0.0 }
 0x104   : > { %1180 = vxpose.xlu0.b32.end [2/2] (short) (narrow) %v678_v43, 8 }
 0x105   : > { %v619_v46 = vpop.f32.mrf.mxu0 }
 0x106   : > { %v643_v47 = vmul.f32 %v2659_v29, %v619_v46 }
 0x108   : > { %v663_v49 = vadd.f32 %v2664_v30, %v643_v47 }
 0x10a   : > { %v679_v53 = vmax.f32 %v663_v49, 0.0 }
 0x10c   : > { %1211 = vxpose.xlu1.b32.start [1/2] (short) (narrow) %v679_v53, 8 }
 0x10d   : > { %v622_v58 = vpop.f32.mrf.mxu0 }
 0x10e   : > { %v644_v59 = vmul.f32 %v2659_v29, %v622_v58  ;;  %v828_v29 = vadd.f32 %v2772_v51, %v808_v7 }
 0x110   : > { %v664_v63 = vadd.f32 %v2664_v30, %v644_v59  ;;  %v844_v11 = vmax.f32 %v828_v29, 0.0  ;;  %v769_v30 = vpop.f32.mrf.mxu1 }
 0x111   : > { %v811_v13 = vmul.f32 %v2764_v45, %v769_v30 }
 0x112   : > { %v680_v2 = vmax.f32 %v664_v63, 0.0  ;;  %1285 = vmatpush.msrb.mxu3 %v844_v11 }
 0x113   : > { %v831_v17 = vadd.f32 %v2772_v51, %v811_v13 }
 0x114   : > { %1212 = vxpose.xlu1.b32.end [2/2] (short) (narrow) %v680_v2, 8 }
 0x115   : > { %v847_v19 = vmax.f32 %v831_v17, 0.0 }
 0x118   : > { %v772_v12 = vpop.f32.mrf.mxu1 }
 0x119   : > { %v812_v27 = vmul.f32 %v2764_v45, %v772_v12 }
 0x11b   : > { %v832_v35 = vadd.f32 %v2772_v51, %v812_v27 }
 0x11d   : > { %v848_v40 = vmax.f32 %v832_v35, 0.0 }
 0x120   : > { %v775_v15 = vpop.f32.mrf.mxu1 }
 0x121   : > { %v813_v25 = vmul.f32 %v2764_v45, %v775_v15 }
 0x123   : > { %v833_v33 = vadd.f32 %v2772_v51, %v813_v25 }
 0x125   : > { %v849_v37 = vmax.f32 %v833_v33, 0.0 }
 0x128   : > { %v778_v23 = vpop.f32.mrf.mxu1 }
 0x129   : > { %v814_v42 = vmul.f32 %v2764_v45, %v778_v23 }
 0x12b   : > { %v834_v47 = vadd.f32 %v2772_v51, %v814_v42 }
 0x12d   : > { %v850_v52 = vmax.f32 %v834_v47, 0.0 }
 0x130   : > { %v781_v32 = vpop.f32.mrf.mxu1 }
 0x131   : > { %v815_v38 = vmul.f32 %v2764_v45, %v781_v32 }
 0x133   : > { %v835_v46 = vadd.f32 %v2772_v51, %v815_v38  ;;  %v861_v38 = vld [vmem:[%s3046_s4 + $0x18] sm:$0xff] }
 0x135   : > { %v851_v49 = vmax.f32 %v835_v46, 0.0 }
 0x138   : > { %v784_v43 = vpop.f32.mrf.mxu1 }
 0x139   : > { %v816_v57 = vmul.f32 %v2764_v45, %v784_v43 }
 0x13b   : > { %v836_v61 = vadd.f32 %v2772_v51, %v816_v57 }
 0x13d   : > { %v852_v63 = vmax.f32 %v836_v61, 0.0 }
 0x140   : > { %v1003_v22 = vpop.trf.xlu0  ;;  %v787_v53 = vpop.f32.mrf.mxu1 }
 0x141   : > { %2322 = vmatmul.msk.f32.vlgmr.msra.gmra.mxu3 %vm1243_vm2, %v1003_v22  ;;  %v817_v56 = vmul.f32 %v2764_v45, %v787_v53 }
 0x142   : > { %1307 = vmatpush.msra.mxu3 %v847_v19 }
 0x143   : > { %v837_v59 = vadd.f32 %v2772_v51, %v817_v56 }
 0x144   : > { %1308 = vmatpush.msra.mxu3 %v846_v21 }
 0x145   : > { %v853_v62 = vmax.f32 %v837_v59, 0.0 }
 0x148   : > { %v790_v55 = vpop.f32.mrf.mxu1 }
 0x149   : > { %v818_v4 = vmul.f32 %v2764_v45, %v790_v55 }
 0x14b   : > { %v838_v8 = vadd.f32 %v2772_v51, %v818_v4 }
 0x14d   : > { %v854_v11 = vmax.f32 %v838_v8, 0.0 }
 0x150   : > { %v1035_v41 = vpop.trf.xlu1  ;;  %v793_v58 = vpop.f32.mrf.mxu1 }
 0x151   : > { %2323 = vmatmul.msk.f32.vlgmr.msrb.gmra.mxu3 %vm1243_vm2, %v1035_v41  ;;  %v819_v3 = vmul.f32 %v2764_v45, %v793_v58 }
 0x152   : > { %1330 = vmatpush.msrb.mxu3 %v849_v37  ;;  %v862_v37 = vld [vmem:[%s3046_s4 + $0x20] sm:$0xf] }
 0x153   : > { %v839_v5 = vadd.f32 %v2772_v51, %v819_v3  ;;  %2305 = vmatpush.msk.msra.mxu2 %vm556_vm0, %v862_v37 }
 0x154   : > { %1331 = vmatpush.msrb.mxu3 %v848_v40  ;;  %v860_v40 = vld [vmem:[%s3046_s4 + $0x10] sm:$0xff] }
 0x155   : > { %v1067_v48 = vpop.trf.xlu2  ;;  %v855_v9 = vmax.f32 %v839_v5, 0.0  ;;  %878 = vmatpush.msra.mxu2 %v861_v38 }
 0x157   : > { %879 = vmatpush.msra.mxu2 %v860_v40 }
 0x158   : > { %v796_v2 = vpop.f32.mrf.mxu1 }
 0x159   : > { %2324 = vmatmul.msk.f32.vlgmr.msra.gmra.mxu3 %vm1243_vm2, %v1067_v48  ;;  %v820_v12 = vmul.f32 %v2764_v45, %v796_v2  ;;  %v859_v48 = vld [vmem:[%s3046_s4 + $0x8] sm:$0xff] }
 0x15a   : > { %1353 = vmatpush.msra.mxu3 %v851_v49  ;;  %v858_v49 = vld [vmem:[%s3046_s4] sm:$0xff]  ;;  %880 = vmatpush.msra.mxu2 %v859_v48 }
 0x15b   : > { %v840_v14 = vadd.f32 %v2772_v51, %v820_v12 }
 0x15c   : > { %1354 = vmatpush.msra.mxu3 %v850_v52  ;;  %881 = vmatpush.msra.mxu2 %v858_v49 }
 0x15d   : > { %v856_v18 = vmax.f32 %v840_v14, 0.0  ;;  %2306 = vmatmul.msk.f32.vlgmr.msra.gmra.mxu2 %vm507_vm1, %v2640_v24 }
 0x160   : > { %v799_v7 = vpop.f32.mrf.mxu1 }
 0x161   : > { %v821_v29 = vmul.f32 %v2764_v45, %v799_v7 }
 0x163   : > { %v841_v13 = vadd.f32 %v2772_v51, %v821_v29 }
 0x165   : > { %v857_v17 = vmax.f32 %v841_v13, 0.0  ;;  %2307 = vmatmul.msk.f32.gmra.mxu2 %vm507_vm1, %v2647_v26 }
 0x16d   : > { %2308 = vmatmul.msk.f32.gmra.mxu2 %vm507_vm1, %v2654_v28 }
 0x170   : > { %v1099_v1 = vpop.trf.xlu0 }
 0x171   : > { %2325 = vmatmul.msk.f32.vlgmr.msrb.gmra.mxu3 %vm1243_vm2, %v1099_v1 }
 0x172   : > { %1376 = vmatpush.msrb.mxu3 %v853_v62 }
 0x174   : > { %1377 = vmatpush.msrb.mxu3 %v852_v63 }
 0x175   : > { %2309 = vmatmul.msk.f32.gmra.mxu2 %vm507_vm1, %v2671_v34 }
 0x17d   : > { %2310 = vmatmul.msk.f32.gmra.mxu2 %vm507_vm1, %v2678_v39 }
 0x180   : > { %v1131_v30 = vpop.trf.xlu1 }
 0x181   : > { %2326 = vmatmul.msk.f32.vlgmr.msra.gmra.mxu3 %vm1243_vm2, %v1131_v30 }
 0x182   : > { %1399 = vmatpush.msra.mxu3 %v855_v9 }
 0x184   : > { %1400 = vmatpush.msra.mxu3 %v854_v11 }
 0x185   : > { %v1163_v15 = vpop.trf.xlu2  ;;  %2311 = vmatmul.msk.f32.gmra.mxu2 %vm507_vm1, %v2685_v44 }
 0x189   : > { %2327 = vmatmul.msk.f32.vlgmr.msrb.gmra.mxu3 %vm1243_vm2, %v1163_v15 }
 0x18a   : > { %1422 = vmatpush.msrb.mxu3 %v857_v17 }
 0x18c   : > { %1423 = vmatpush.msrb.mxu3 %v856_v18 }
 0x18d   : > { %2312 = vmatmul.msk.f32.gmra.mxu2 %vm507_vm1, %v2692_v50 }
 0x195   : > { %2313 = vmatmul.msk.f32.gmra.mxu2 %vm507_vm1, %v2699_v54 }
 0x19d   : > { %2314 = vmatmul.msk.f32.gmra.mxu2 %vm507_vm1, %v2706_v60 }
 0x1a0   : > { %v1195_v19 = vpop.trf.xlu0 }
 0x1a1   : > { %2328 = vmatmul.msk.f32.vlgmr.msra.gmra.mxu3 %vm1243_vm2, %v1195_v19  ;;  %v2914_v19 = vld [vmem:[%s3052_s10] ss:$0 sm:$0xff] }
 0x1a5   : > { %2315 = vmatmul.msk.f32.gmra.mxu2 %vm507_vm1, %v2713_v0 }
 0x1ad   : > { %2316 = vmatmul.msk.f32.gmra.mxu2 %vm507_vm1, %v2720_v6 }
 0x1b0   : > { %v1227_v21 = vpop.trf.xlu1 }
 0x1b1   : > { %2329 = vmatmul.msk.f32.vlgmr.msrb.gmra.mxu3 %vm1243_vm2, %v1227_v21 }
 0x1b5   : > { %2317 = vmatmul.msk.f32.gmra.mxu2 %vm507_vm1, %v2727_v10 }
 0x1bd   : > { %2318 = vmatmul.msk.f32.gmra.mxu2 %vm507_vm1, %v2734_v16 }
 0x1c4   : > { %v1264_v45 = vpop.f32.mrf.mxu3 }
 0x1c5   : > { %v1428_v22 = vmul.f32 0.25, %v1264_v45  ;;  %2319 = vmatmul.msk.f32.gmra.mxu2 %vm507_vm1, %v2741_v20 }
 0x1c7   : > { %v1437_v23 = vsel %vm1436_vm3, %v1428_v22, -inf }
 0x1c8   : > { %1438 = vmax.xlane.f32.xlu2 %v1437_v23 }
 0x1cd   : > { %2320 = vmatmul.msk.f32.gmra.mxu2 %vm507_vm1, %v2748_v31 }
 0x1d4   : > { %v1287_v51 = vpop.f32.mrf.mxu3 }
 0x1d5   : > { %v1429_v25 = vmul.f32 0.25, %v1287_v51  ;;  %2321 = vmatmul.msk.f32.gmra.mxu2 %vm507_vm1, %v2755_v36  ;;  %v2908_v36 = vld [vmem:[%s3051_s9] ss:$0 sm:$0xff] }
 0x1d7   : > { %v1440_v27 = vsel %vm1436_vm3, %v1429_v25, -inf }
 0x1d8   : > { %1441 = vmax.xlane.f32.xlu0 %v1440_v27 }
 0x1dc   : > { %v1310_v32 = vpop.f32.mrf.mxu3 }
 0x1dd   : > { %v1430_v33 = vmul.f32 0.25, %v1310_v32 }
 0x1df   : > { %v1443_v35 = vsel %vm1436_vm3, %v1430_v33, -inf }
 0x1e0   : > { %1444 = vmax.xlane.f32.xlu1 %v1443_v35  ;;  %v883_v15 = vpop.f32.mrf.mxu2 }
 0x1e1   : > { %v935_v18 = vmul.f32 %v2908_v36, %v883_v15 }
 0x1e8   : > { %v886_v21 = vpop.f32.mrf.mxu2 }
 0x1e9   : > { %v936_v45 = vmul.f32 %v2908_v36, %v886_v21 }
 0x1eb   : > { %v956_v23 = vadd.f32 %v2914_v19, %v936_v45 }
 0x1ed   : > { %v972_v51 = vmax.f32 %v956_v23, 0.0 }
 0x1ef   : > { %2330 = vmatpush.xpose.msk.msra.mxu3 %vm1629_vm4, %v972_v51 }
 0x1f4   : > { %v1333_v41 = vpop.f32.mrf.mxu3 }
 0x1f5   : > { %v1431_v42 = vmul.f32 0.25, %v1333_v41 }
 0x1f7   : > { %v1446_v43 = vsel %vm1436_vm3, %v1431_v42, -inf }
 0x1f8   : > { %1447 = vmax.xlane.f32.xlu1 %v1446_v43 }
 0x204   : > { %v1356_v46 = vpop.f32.mrf.mxu3 }
 0x205   : > { %v2829_v47 = vmul.f32 0.25, %v1356_v46 }
 0x207   : > { %v1449_v52 = vsel %vm1436_vm3, %v2829_v47, -inf }
 0x208   : > { %1450 = vmax.xlane.f32.xlu2 %v1449_v52 }
 0x20c   : > { %v1379_v53 = vpop.f32.mrf.mxu3 }
 0x20d   : > { %v1433_v55 = vmul.f32 0.25, %v1379_v53 }
 0x20f   : > { %v1452_v56 = vsel %vm1436_vm3, %v1433_v55, -inf }
 0x210   : > { %1453 = vmax.xlane.f32.xlu1 %v1452_v56 }
 0x224   : > { %v1402_v57 = vpop.f32.mrf.mxu3 }
 0x225   : > { %v2848_v58 = vmul.f32 0.25, %v1402_v57 }
 0x227   : > { %v1455_v24 = vsel %vm1436_vm3, %v2848_v58, -inf }
 0x228   : > { %1456 = vmax.xlane.f32.xlu2 %v1455_v24 }
 0x234   : > { %v1425_v26 = vpop.f32.mrf.mxu3 }
 0x235   : > { %v2856_v59 = vmul.f32 0.25, %v1425_v26 }
 0x237   : > { %v1458_v28 = vsel %vm1436_vm3, %v2856_v59, -inf }
 0x238   : > { %1459 = vmax.xlane.f32.xlu0 %v1458_v28 }
 0x23b   : > { %v1439_v34 = vpop.xlane.xlu2 %1438 }
 0x23c   : > { %v1461_v61 = vsub.f32 %v1428_v22, %v1439_v34  ;;  %v955_v22 = vadd.f32 %v2914_v19, %v935_v18 }
 0x23e   : > { %v1469_v62 = vmul.f32 1.442695, %v1461_v61  ;;  %v971_v32 = vmax.f32 %v955_v22, 0.0 }
 0x240   : > { %2403 = vpow2.f32 %v1469_v62  ;;  %2331 = vmatpush.xpose.msk.msra.mxu3 %vm1629_vm4, %v971_v32 }
 0x246   : > { %v2864_v39 = vpop.eup %2403 }
 0x247   : > { %v1485_v44 = vsel %vm1436_vm3, %v2864_v39, 0.0 }
 0x248   : > { %1486 = vadd.xlane.f32.xlu1 %v1485_v44 }
 0x24b   : > { %v1442_v63 = vpop.xlane.xlu0 %1441 }
 0x24c   : > { %v1462_v1 = vsub.f32 %v1429_v25, %v1442_v63 }
 0x24e   : > { %v1471_v2 = vmul.f32 1.442695, %v1462_v1 }
 0x250   : > { %2405 = vpow2.f32 %v1471_v2 }
 0x253   : > { %v1445_v50 = vpop.xlane.xlu1 %1444 }
 0x254   : > { %v1463_v3 = vsub.f32 %v1430_v33, %v1445_v50  ;;  %v889_v33 = vpop.f32.mrf.mxu2 }
 0x255   : > { %v937_v43 = vmul.f32 %v2908_v36, %v889_v33 }
 0x256   : > { %v2872_v4 = vpop.eup %2405  ;;  %v1473_v54 = vmul.f32 1.442695, %v1463_v3 }
 0x257   : > { %v1488_v5 = vsel %vm1436_vm3, %v2872_v4, 0.0  ;;  %v957_v49 = vadd.f32 %v2914_v19, %v937_v43 }
 0x258   : > { %2407 = vpow2.f32 %v1473_v54  ;;  %1489 = vadd.xlane.f32.xlu2 %v1488_v5 }
 0x259   : > { %v973_v53 = vmax.f32 %v957_v49, 0.0 }
 0x25c   : > { %v892_v37 = vpop.f32.mrf.mxu2 }
 0x25d   : > { %v938_v40 = vmul.f32 %v2908_v36, %v892_v37 }
 0x25e   : > { %v2878_v60 = vpop.eup %2407 }
 0x25f   : > { %v1491_v7 = vsel %vm1436_vm3, %v2878_v60, 0.0 }
 0x260   : > { %1492 = vadd.xlane.f32.xlu1 %v1491_v7 }
 0x26b   : > { %v1448_v0 = vpop.xlane.xlu1 %1447 }
 0x26c   : > { %v1464_v8 = vsub.f32 %v1431_v42, %v1448_v0  ;;  %v958_v42 = vadd.f32 %v2914_v19, %v938_v40 }
 0x26e   : > { %v1475_v9 = vmul.f32 1.442695, %v1464_v8  ;;  %v974_v46 = vmax.f32 %v958_v42, 0.0 }
 0x270   : > { %2409 = vpow2.f32 %v1475_v9  ;;  %2333 = vmatpush.xpose.msk.msrb.mxu3 %vm1629_vm4, %v974_v46 }
 0x274   : > { %2334 = vmatpush.xpose.msk.msrb.mxu3 %vm1629_vm4, %v973_v53 }
 0x276   : > { %v2888_v6 = vpop.eup %2409 }
 0x277   : > { %v1494_v29 = vsel %vm1436_vm3, %v2888_v6, 0.0 }
 0x278   : > { %1495 = vadd.xlane.f32.xlu0 %v1494_v29 }
 0x27b   : > { %v1451_v10 = vpop.xlane.xlu2 %1450 }
 0x27c   : > { %v1465_v11 = vsub.f32 %v2829_v47, %v1451_v10 }
 0x27e   : > { %v1477_v16 = vmul.f32 1.442695, %v1465_v11 }
 0x280   : > { %2411 = vpow2.f32 %v1477_v16 }
 0x283   : > { %v1454_v30 = vpop.xlane.xlu1 %1453 }
 0x284   : > { %v1466_v12 = vsub.f32 %v1433_v55, %v1454_v30  ;;  %v895_v55 = vpop.f32.mrf.mxu2 }
 0x285   : > { %v939_v2 = vmul.f32 %v2908_v36, %v895_v55 }
 0x286   : > { %v2897_v20 = vpop.eup %2411  ;;  %v1479_v13 = vmul.f32 1.442695, %v1466_v12 }
 0x287   : > { %v1497_v14 = vsel %vm1436_vm3, %v2897_v20, 0.0  ;;  %v959_v8 = vadd.f32 %v2914_v19, %v939_v2 }
 0x288   : > { %2413 = vpow2.f32 %v1479_v13  ;;  %1498 = vadd.xlane.f32.xlu2 %v1497_v14 }
 0x289   : > { %v975_v11 = vmax.f32 %v959_v8, 0.0 }
 0x28c   : > { %v898_v57 = vpop.f32.mrf.mxu2 }
 0x28d   : > { %v940_v34 = vmul.f32 %v2908_v36, %v898_v57 }
 0x28e   : > { %v2901_v31 = vpop.eup %2413 }
 0x28f   : > { %v1500_v17 = vsel %vm1436_vm3, %v2901_v31, 0.0  ;;  %v960_v50 = vadd.f32 %v2914_v19, %v940_v34 }
 0x290   : > { %1501 = vadd.xlane.f32.xlu1 %v1500_v17 }
 0x291   : > { %v976_v9 = vmax.f32 %v960_v50, 0.0 }
 0x294   : > { %v901_v26 = vpop.f32.mrf.mxu2 }
 0x295   : > { %v941_v21 = vmul.f32 %v2908_v36, %v901_v26 }
 0x297   : > { %v961_v33 = vadd.f32 %v2914_v19, %v941_v21 }
 0x29b   : > { %v1457_v25 = vpop.xlane.xlu2 %1456 }
 0x29c   : > { %v1467_v27 = vsub.f32 %v2848_v58, %v1457_v25  ;;  %v904_v44 = vpop.f32.mrf.mxu2 }
 0x29d   : > { %v942_v13 = vmul.f32 %v2908_v36, %v904_v44 }
 0x29e   : > { %v1481_v35 = vmul.f32 1.442695, %v1467_v27 }
 0x29f   : > { %v962_v45 = vadd.f32 %v2914_v19, %v942_v13 }
 0x2a0   : > { %2415 = vpow2.f32 %v1481_v35 }
 0x2a1   : > { %v978_v35 = vmax.f32 %v962_v45, 0.0 }
 0x2a4   : > { %v907_v10 = vpop.f32.mrf.mxu2 }
 0x2a5   : > { %v943_v49 = vmul.f32 %v2908_v36, %v907_v10 }
 0x2a6   : > { %v2922_v38 = vpop.eup %2415 }
 0x2a7   : > { %v1503_v41 = vsel %vm1436_vm3, %v2922_v38, 0.0 }
 0x2a8   : > { %1504 = vadd.xlane.f32.xlu0 %v1503_v41 }
 0x2ab   : > { %v1460_v47 = vpop.xlane.xlu0 %1459 }
 0x2ac   : > { %v1468_v48 = vsub.f32 %v2856_v59, %v1460_v47  ;;  %v910_v17 = vpop.f32.mrf.mxu2 }
 0x2ad   : > { %v944_v37 = vmul.f32 %v2908_v36, %v910_v17 }
 0x2ae   : > { %v1483_v52 = vmul.f32 1.442695, %v1468_v48  ;;  %v977_v48 = vmax.f32 %v961_v33, 0.0 }
 0x2b0   : > { %2417 = vpow2.f32 %v1483_v52  ;;  %v964_v52 = vadd.f32 %v2914_v19, %v944_v37 }
 0x2b4   : > { %v913_v43 = vpop.f32.mrf.mxu2 }
 0x2b6   : > { %v2933_v56 = vpop.eup %2417 }
 0x2b7   : > { %v1506_v58 = vsel %vm1436_vm3, %v2933_v56, 0.0 }
 0x2b8   : > { %1507 = vadd.xlane.f32.xlu2 %v1506_v58  ;;  %v963_v58 = vadd.f32 %v2914_v19, %v943_v49 }
 0x2bb   : > { %v1487_v24 = vpop.xlane.xlu1 %1486 }
 0x2bc   : > { %2419 = vrcp.f32 %v1487_v24  ;;  %v1520_v62 = vand.u32 2147483648, %v1487_v24  ;;  %v1518_v1 = vand.u32 2147483647, %v1487_v24  ;;  %vm1514_vm6 = vweird.f32 %v1487_v24 }
 0x2be   : > { %v1521_v54 = vor.u32 1.1754944e-38, %v1520_v62  ;;  %vm1519_vm8 = vcmp.eq.f32.partialorder %v1518_v1, 8.507059e+37 }
 0x2c2   : > { %v2420_v59 = vpop.eup %2419 }
 0x2c3   : > { %v1510_v28 = vmul.f32 %v2420_v59, %v1487_v24  ;;  %vm1515_vm5 = vweird.f32 %v2420_v59  ;;  %v980_v24 = vmax.f32 %v964_v52, 0.0 }
 0x2c4   : > { %vm1516_vm7 = vmor %vm1514_vm6, %vm1515_vm5 }
 0x2c5   : > { %v1511_v61 = vsub.f32 1.0, %v1510_v28  ;;  %v979_v28 = vmax.f32 %v963_v58, 0.0 }
 0x2c7   : > { %v1512_v63 = vmul.f32 %v2420_v59, %v1511_v61 }
 0x2c9   : > { %v1513_v3 = vadd.f32 %v2420_v59, %v1512_v63 }
 0x2cb   : > { %v1517_v5 = vsel %vm1516_vm7, %v2420_v59, %v1513_v3  ;;  %v1490_v7 = vpop.xlane.xlu2 %1489  ;;  %v916_v59 = vpop.f32.mrf.mxu2 }
 0x2cc   : > { %v1522_v0 = vsel %vm1519_vm8, %v1521_v54, %v1517_v5  ;;  %2421 = vrcp.f32 %v1490_v7  ;;  %v1535_v15 = vand.u32 2147483648, %v1490_v7  ;;  %vm1529_vm10 = vweird.f32 %v1490_v7 }
 0x2cd   : > { %v1523_v29 = vmul.f32 %v2864_v39, %v1522_v0  ;;  %v1533_v39 = vand.u32 2147483647, %v1490_v7  ;;  %v946_v63 = vmul.f32 %v2908_v36, %v916_v59  ;;  %v945_v54 = vmul.f32 %v2908_v36, %v913_v43 }
 0x2ce   : > { %v1536_v51 = vor.u32 1.1754944e-38, %v1535_v15 }
 0x2cf   : > { %2332 = vmatmul.msk.f32.vlgmr.msra.gmra.mxu3 %vm1629_vm4, %v1523_v29  ;;  %vm1534_vm12 = vcmp.eq.f32.partialorder %v1533_v39, 8.507059e+37  ;;  %v966_v5 = vadd.f32 %v2914_v19, %v946_v63  ;;  %v965_v10 = vadd.f32 %v2914_v19, %v945_v54 }
 0x2d0   : > { %2336 = vmatpush.xpose.msk.msra.mxu3 %vm1629_vm4, %v976_v9 }
 0x2d2   : > { %v2422_v16 = vpop.eup %2421 }
 0x2d3   : > { %v1525_v30 = vmul.f32 %v2422_v16, %v1490_v7  ;;  %v1493_v12 = vpop.xlane.xlu1 %1492  ;;  %vm1530_vm9 = vweird.f32 %v2422_v16  ;;  %v919_v61 = vpop.f32.mrf.mxu2 }
 0x2d4   : > { %2423 = vrcp.f32 %v1493_v12  ;;  %2337 = vmatpush.xpose.msk.msra.mxu3 %vm1629_vm4, %v975_v11  ;;  %vm1531_vm11 = vmor %vm1529_vm10, %vm1530_vm9  ;;  %v1550_v42 = vand.u32 2147483648, %v1493_v12  ;;  %v1548_v47 = vand.u32 2147483647, %v1493_v12  ;;  %vm1544_vm14 = vweird.f32 %v1493_v12 }
 0x2d5   : > { %v1526_v14 = vsub.f32 1.0, %v1525_v30  ;;  %v982_v11 = vmax.f32 %v966_v5, 0.0 }
 0x2d6   : > { %v1551_v55 = vor.u32 1.1754944e-38, %v1550_v42  ;;  %vm1549_vm0 = vcmp.eq.f32.partialorder %v1548_v47, 8.507059e+37 }
 0x2d7   : > { %v1527_v18 = vmul.f32 %v2422_v16, %v1526_v14 }
 0x2d9   : > { %v1528_v22 = vadd.f32 %v2422_v16, %v1527_v18 }
 0x2da   : > { %v2424_v23 = vpop.eup %2423 }
 0x2db   : > { %v1532_v25 = vsel %vm1531_vm11, %v2422_v16, %v1528_v22  ;;  %v1540_v27 = vmul.f32 %v2424_v23, %v1493_v12  ;;  %vm1545_vm13 = vweird.f32 %v2424_v23  ;;  %v922_v50 = vpop.f32.mrf.mxu2  ;;  %v981_v12 = vmax.f32 %v965_v10, 0.0 }
 0x2dc   : > { %v1537_v32 = vsel %vm1534_vm12, %v1536_v51, %v1532_v25  ;;  %vm1546_vm15 = vmor %vm1544_vm14, %vm1545_vm13  ;;  %v948_v17 = vmul.f32 %v2908_v36, %v922_v50 }
 0x2dd   : > { %v1541_v40 = vsub.f32 1.0, %v1540_v27  ;;  %v1538_v41 = vmul.f32 %v2872_v4, %v1537_v32 }
 0x2de   : > { %v968_v22 = vadd.f32 %v2914_v19, %v948_v17 }
 0x2df   : > { %v1542_v46 = vmul.f32 %v2424_v23, %v1541_v40  ;;  %2335 = vmatmul.msk.f32.vlgmr.msrb.gmra.mxu3 %vm1629_vm4, %v1538_v41 }
 0x2e0   : > { %2339 = vmatpush.xpose.msk.msrb.mxu3 %vm1629_vm4, %v978_v35  ;;  %v984_v40 = vmax.f32 %v968_v22, 0.0 }
 0x2e1   : > { %v1543_v53 = vadd.f32 %v2424_v23, %v1542_v46 }
 0x2e3   : > { %v1547_v57 = vsel %vm1546_vm15, %v2424_v23, %v1543_v53  ;;  %v925_v30 = vpop.f32.mrf.mxu2 }
 0x2e4   : > { %v1552_v4 = vsel %vm1549_vm0, %v1551_v55, %v1547_v57  ;;  %2340 = vmatpush.xpose.msk.msrb.mxu3 %vm1629_vm4, %v977_v48  ;;  %v949_v52 = vmul.f32 %v2908_v36, %v925_v30 }
 0x2e5   : > { %v1553_v26 = vmul.f32 %v2878_v60, %v1552_v4 }
 0x2e6   : > { %v969_v58 = vadd.f32 %v2914_v19, %v949_v52 }
 0x2e7   : > { %2338 = vmatmul.msk.f32.vlgmr.msra.gmra.mxu3 %vm1629_vm4, %v1553_v26 }
 0x2e8   : > { %2342 = vmatpush.xpose.msk.msra.mxu3 %vm1629_vm4, %v980_v24  ;;  %v985_v59 = vmax.f32 %v969_v58, 0.0 }
 0x2eb   : > { %v1496_v34 = vpop.xlane.xlu0 %1495  ;;  %v928_v51 = vpop.f32.mrf.mxu2 }
 0x2ec   : > { %2425 = vrcp.f32 %v1496_v34  ;;  %2343 = vmatpush.xpose.msk.msra.mxu3 %vm1629_vm4, %v979_v28  ;;  %v1565_v2 = vand.u32 2147483648, %v1496_v34  ;;  %v1563_v60 = vand.u32 2147483647, %v1496_v34  ;;  %vm1559_vm2 = vweird.f32 %v1496_v34 }
 0x2ed   : > { %v950_v41 = vmul.f32 %v2908_v36, %v928_v51 }
 0x2ee   : > { %v1566_v0 = vor.u32 1.1754944e-38, %v1565_v2  ;;  %vm1564_vm5 = vcmp.eq.f32.partialorder %v1563_v60, 8.507059e+37 }
 0x2ef   : > { %v970_v53 = vadd.f32 %v2914_v19, %v950_v41 }
 0x2f1   : > { %v986_v24 = vmax.f32 %v970_v53, 0.0 }
 0x2f2   : > { %v2426_v62 = vpop.eup %2425 }
 0x2f3   : > { %v1555_v44 = vmul.f32 %v2426_v62, %v1496_v34  ;;  %vm1560_vm1 = vweird.f32 %v2426_v62 }
 0x2f4   : > { %vm1561_vm3 = vmor %vm1559_vm2, %vm1560_vm1 }
 0x2f5   : > { %v1556_v1 = vsub.f32 1.0, %v1555_v44 }
 0x2f7   : > { %v1557_v3 = vmul.f32 %v2426_v62, %v1556_v1 }
 0x2f9   : > { %v1558_v7 = vadd.f32 %v2426_v62, %v1557_v3 }
 0x2fb   : > { %v1562_v8 = vsel %vm1561_vm3, %v2426_v62, %v1558_v7  ;;  %v1499_v9 = vpop.xlane.xlu2 %1498 }
 0x2fc   : > { %v1567_v29 = vsel %vm1564_vm5, %v1566_v0, %v1562_v8  ;;  %2427 = vrcp.f32 %v1499_v9  ;;  %v1580_v39 = vand.u32 2147483648, %v1499_v9  ;;  %v1578_v45 = vand.u32 2147483647, %v1499_v9 }
 0x2fd   : > { %v1568_v16 = vmul.f32 %v2888_v6, %v1567_v29  ;;  %v947_v6 = vmul.f32 %v2908_v36, %v919_v61  ;;  %vm1574_vm7 = vweird.f32 %v1499_v9 }
 0x2fe   : > { %v1581_v27 = vor.u32 1.1754944e-38, %v1580_v39  ;;  %vm1579_vm9 = vcmp.eq.f32.partialorder %v1578_v45, 8.507059e+37 }
 0x2ff   : > { %2341 = vmatmul.msk.f32.vlgmr.msrb.gmra.mxu3 %vm1629_vm4, %v1568_v16  ;;  %v967_v37 = vadd.f32 %v2914_v19, %v947_v6 }
 0x300   : > { %2345 = vmatpush.xpose.msk.msrb.mxu3 %vm1629_vm4, %v982_v11 }
 0x301   : > { %v983_v49 = vmax.f32 %v967_v37, 0.0 }
 0x302   : > { %v2428_v13 = vpop.eup %2427 }
 0x303   : > { %v1570_v14 = vmul.f32 %v2428_v13, %v1499_v9  ;;  %v1502_v15 = vpop.xlane.xlu1 %1501  ;;  %vm1575_vm6 = vweird.f32 %v2428_v13 }
 0x304   : > { %2429 = vrcp.f32 %v1502_v15  ;;  %2346 = vmatpush.xpose.msk.msrb.mxu3 %vm1629_vm4, %v981_v12  ;;  %vm1576_vm8 = vmor %vm1574_vm7, %vm1575_vm6  ;;  %v1595_v46 = vand.u32 2147483648, %v1502_v15  ;;  %v1593_v48 = vand.u32 2147483647, %v1502_v15  ;;  %vm1589_vm11 = vweird.f32 %v1502_v15 }
 0x305   : > { %v1571_v18 = vsub.f32 1.0, %v1570_v14 }
 0x306   : > { %v1596_v57 = vor.u32 1.1754944e-38, %v1595_v46  ;;  %vm1594_vm13 = vcmp.eq.f32.partialorder %v1593_v48, 8.507059e+37 }
 0x307   : > { %v1572_v21 = vmul.f32 %v2428_v13, %v1571_v18 }
 0x309   : > { %v1573_v23 = vadd.f32 %v2428_v13, %v1572_v21 }
 0x30a   : > { %v2430_v25 = vpop.eup %2429 }
 0x30b   : > { %v1577_v32 = vsel %vm1576_vm8, %v2428_v13, %v1573_v23  ;;  %v1585_v33 = vmul.f32 %v2430_v25, %v1502_v15  ;;  %vm1590_vm10 = vweird.f32 %v2430_v25 }
 0x30c   : > { %v1582_v35 = vsel %vm1579_vm9, %v1581_v27, %v1577_v32  ;;  %vm1591_vm12 = vmor %vm1589_vm11, %vm1590_vm10 }
 0x30d   : > { %v1586_v42 = vsub.f32 1.0, %v1585_v33  ;;  %v1583_v43 = vmul.f32 %v2897_v20, %v1582_v35 }
 0x30f   : > { %v1587_v47 = vmul.f32 %v2430_v25, %v1586_v42  ;;  %2344 = vmatmul.msk.f32.vlgmr.msra.gmra.mxu3 %vm1629_vm4, %v1583_v43 }
 0x310   : > { %2348 = vmatpush.xpose.msk.msra.mxu3 %vm1629_vm4, %v984_v40 }
 0x311   : > { %v1588_v55 = vadd.f32 %v2430_v25, %v1587_v47 }
 0x313   : > { %v1592_v4 = vsel %vm1591_vm12, %v2430_v25, %v1588_v55 }
 0x314   : > { %v1597_v20 = vsel %vm1594_vm13, %v1596_v57, %v1592_v4  ;;  %2349 = vmatpush.xpose.msk.msra.mxu3 %vm1629_vm4, %v983_v49 }
 0x315   : > { %v1598_v26 = vmul.f32 %v2901_v31, %v1597_v20 }
 0x317   : > { %2347 = vmatmul.msk.f32.vlgmr.msrb.gmra.mxu3 %vm1629_vm4, %v1598_v26 }
 0x318   : > { %2351 = vmatpush.xpose.msk.msrb.mxu3 %vm1629_vm4, %v986_v24 }
 0x31b   : > { %v1505_v36 = vpop.xlane.xlu0 %1504 }
 0x31c   : > { %2431 = vrcp.f32 %v1505_v36  ;;  %2352 = vmatpush.xpose.msk.msrb.mxu3 %vm1629_vm4, %v985_v59  ;;  %v1610_v62 = vand.u32 2147483648, %v1505_v36  ;;  %v1608_v19 = vand.u32 2147483647, %v1505_v36  ;;  %vm1604_vm15 = vweird.f32 %v1505_v36 }
 0x31e   : > { %v1611_v31 = vor.u32 1.1754944e-38, %v1610_v62  ;;  %vm1609_vm1 = vcmp.eq.f32.partialorder %v1608_v19, 8.507059e+37 }
 0x322   : > { %v2432_v28 = vpop.eup %2431 }
 0x323   : > { %v1600_v34 = vmul.f32 %v2432_v28, %v1505_v36  ;;  %vm1605_vm14 = vweird.f32 %v2432_v28 }
 0x324   : > { %vm1606_vm0 = vmor %vm1604_vm15, %vm1605_vm14 }
 0x325   : > { %v1601_v61 = vsub.f32 1.0, %v1600_v34 }
 0x327   : > { %v1602_v44 = vmul.f32 %v2432_v28, %v1601_v61 }
 0x329   : > { %v1603_v63 = vadd.f32 %v2432_v28, %v1602_v44 }
 0x32b   : > { %v1607_v1 = vsel %vm1606_vm0, %v2432_v28, %v1603_v63  ;;  %v1508_v2 = vpop.xlane.xlu2 %1507 }
 0x32c   : > { %v1612_v50 = vsel %vm1609_vm1, %v1611_v31, %v1607_v1  ;;  %2433 = vrcp.f32 %v1508_v2  ;;  %v1625_v7 = vand.u32 2147483648, %v1508_v2  ;;  %v1623_v8 = vand.u32 2147483647, %v1508_v2 }
 0x32d   : > { %v1613_v3 = vmul.f32 %v2922_v38, %v1612_v50  ;;  %vm1619_vm3 = vweird.f32 %v1508_v2 }
 0x32e   : > { %v1626_v29 = vor.u32 1.1754944e-38, %v1625_v7  ;;  %vm1624_vm6 = vcmp.eq.f32.partialorder %v1623_v8, 8.507059e+37 }
 0x32f   : > { %2350 = vmatmul.msk.f32.vlgmr.msra.gmra.mxu3 %vm1629_vm4, %v1613_v3 }
 0x332   : > { %v2434_v60 = vpop.eup %2433 }
 0x333   : > { %v1615_v54 = vmul.f32 %v2434_v60, %v1508_v2  ;;  %vm1620_vm2 = vweird.f32 %v2434_v60 }
 0x334   : > { %vm1621_vm5 = vmor %vm1619_vm3, %vm1620_vm2 }
 0x335   : > { %v1616_v5 = vsub.f32 1.0, %v1615_v54 }
 0x337   : > { %v1617_v0 = vmul.f32 %v2434_v60, %v1616_v5 }
 0x339   : > { %v1618_v9 = vadd.f32 %v2434_v60, %v1617_v0 }
 0x33b   : > { %v1622_v10 = vsel %vm1621_vm5, %v2434_v60, %v1618_v9 }
 0x33c   : > { %v1627_v11 = vsel %vm1624_vm6, %v1626_v29, %v1622_v10 }
 0x33d   : > { %v1628_v16 = vmul.f32 %v2933_v56, %v1627_v11 }
 0x33f   : > { %2353 = vmatmul.msk.f32.vlgmr.msrb.gmra.mxu3 %vm1629_vm4, %v1628_v16 }
 0x352   : > { %v1656_v38 = vpop.f32.mrf.mxu3 }
 0x353   : > { %1862 = vxpose.xlu1.b32.start.end [1/1] (short) (narrow) %v1656_v38, 16 }
 0x362   : > { %v1685_v30 = vpop.f32.mrf.mxu3 }
 0x363   : > { %1894 = vxpose.xlu0.b32.start.end [1/1] (short) (narrow) %v1685_v30, 16 }
 0x36a   : > { %v1714_v12 = vpop.f32.mrf.mxu3 }
 0x36b   : > { %1926 = vxpose.xlu2.b32.start.end [1/1] (short) (narrow) %v1714_v12, 16 }
 0x382   : > { %v1743_v13 = vpop.f32.mrf.mxu3 }
 0x383   : > { %1958 = vxpose.xlu0.b32.start.end [1/1] (short) (narrow) %v1743_v13, 16 }
 0x392   : > { %v1772_v14 = vpop.f32.mrf.mxu3 }
 0x393   : > { %1990 = vxpose.xlu2.b32.start.end [1/1] (short) (narrow) %v1772_v14, 16 }
 0x39a   : > { %v1801_v15 = vpop.f32.mrf.mxu3 }
 0x39b   : > { %2022 = vxpose.xlu0.b32.start.end [1/1] (short) (narrow) %v1801_v15, 16 }
 0x3b2   : > { %v1830_v17 = vpop.f32.mrf.mxu3 }
 0x3b3   : > { %2054 = vxpose.xlu1.b32.start.end [1/1] (short) (narrow) %v1830_v17, 16 }
 0x3c2   : > { %v1859_v18 = vpop.f32.mrf.mxu3 }
 0x3c3   : > { %2086 = vxpose.xlu2.b32.start.end [1/1] (short) (narrow) %v1859_v18, 16 }
 0x3f7   : > { %v1878_v45 = vpop.trf.xlu1 }
 0x3f8   : > { %2118 = vst.msk [vmem:[%s2993_s27] sm:$0xff] %vm1629_vm4, %v1878_v45 }
 0x3ff   : > { %v1879_v22 = vpop.trf.xlu1 }
 0x400   : > { %2119 = vst.msk [vmem:[%s2993_s27 + $0x8] sm:$0xff] %vm1629_vm4, %v1879_v22 }
 0x404   : > { %v1942_v56 = vpop.trf.xlu2 }
 0x405   : > { %2122 = vst.msk [vmem:[%s2993_s27 + $0x20] sm:$0xff] %vm1629_vm4, %v1942_v56 }
 0x407   : > { %v1910_v39 = vpop.trf.xlu0 }
 0x408   : > { %2120 = vst.msk [vmem:[%s2993_s27 + $0x10] sm:$0xff] %vm1629_vm4, %v1910_v39 }
 0x40c   : > { %v1943_v21 = vpop.trf.xlu2 }
 0x40d   : > { %2123 = vst.msk [vmem:[%s2993_s27 + $0x28] sm:$0xff] %vm1629_vm4, %v1943_v21 }
 0x40f   : > { %v1911_v6 = vpop.trf.xlu0 }
 0x410   : > { %2121 = vst.msk [vmem:[%s2993_s27 + $0x18] sm:$0xff] %vm1629_vm4, %v1911_v6 }
 0x427   : > { %v1974_v23 = vpop.trf.xlu0 }
 0x428   : > { %2124 = vst.msk [vmem:[%s2993_s27 + $0x30] sm:$0xff] %vm1629_vm4, %v1974_v23 }
 0x42c   : > { %v2006_v51 = vpop.trf.xlu2 }
 0x42d   : > { %2126 = vst.msk [vmem:[%s2993_s27 + $0x40] sm:$0xff] %vm1629_vm4, %v2006_v51 }
 0x42f   : > { %v1975_v25 = vpop.trf.xlu0 }
 0x430   : > { %2125 = vst.msk [vmem:[%s2993_s27 + $0x38] sm:$0xff] %vm1629_vm4, %v1975_v25 }
 0x434   : > { %v2007_v27 = vpop.trf.xlu2 }
 0x435   : > { %2127 = vst.msk [vmem:[%s2993_s27 + $0x48] sm:$0xff] %vm1629_vm4, %v2007_v27 }
 0x43f   : > { %v2038_v32 = vpop.trf.xlu0 }
 0x440   : > { %2128 = vst.msk [vmem:[%s2993_s27 + $0x50] sm:$0xff] %vm1629_vm4, %v2038_v32 }
 0x447   : > { %v2039_v33 = vpop.trf.xlu0 }
 0x448   : > { %2129 = vst.msk [vmem:[%s2993_s27 + $0x58] sm:$0xff] %vm1629_vm4, %v2039_v33 }
 0x457   : > { %v2070_v35 = vpop.trf.xlu1 }
 0x458   : > { %2130 = vst.msk [vmem:[%s2993_s27 + $0x60] sm:$0xff] %vm1629_vm4, %v2070_v35 }
 0x45c   : > { %v2102_v37 = vpop.trf.xlu2 }
 0x45d   : > { %2132 = vst.msk [vmem:[%s2993_s27 + $0x70] sm:$0xff] %vm1629_vm4, %v2102_v37 }
 0x45f   : > { %v2071_v40 = vpop.trf.xlu1 }
 0x460   : > { %2131 = vst.msk [vmem:[%s2993_s27 + $0x68] sm:$0xff] %vm1629_vm4, %v2071_v40 }
 0x464   : > { %v2103_v41 = vpop.trf.xlu2 }
 0x465   : > { %2133 = vst.msk [vmem:[%s2993_s27 + $0x78] sm:$0xff] %vm1629_vm4, %v2103_v41 }
 0x466 PF: > { %s21_s21 = sadd.s32 1, %s2473_s21   ;;  %s3054_s17 = smov %s2465_s19 }
 0x467   : > { %p18_p7 = scmp.ge.s32.totalorder %s21_s21, 6   ;;  %s3055_s18 = smov %s2469_s20 }
 0x468   : > { %s3056_s19 = smov %s3059_s22  ;;  %s3057_s20 = smov %s3063_s23 }
 0x469   :  { %20 = sbr.rel (!%p18_p7) target bundleno = 3 (0x3), region = 97 }

// kernel: cross_transformer_forward.3
= control target key start
LH: loop header
LB: loop body
LE: loop exit
PB: predicated region body
PF: predicated region fallthrough
CT: control target
= control target key end

     0   :  { %s846_s18 = smov 0   ;;  %s848_s19 = smov 0   ;;  %s1063_s0 = inlined_call_operand.vmem [shape: f32[2,16,16,72], index: 0, kind: input, shape index: {}]   ;;  %s1064_s1 = inlined_call_operand.vmem [shape: f32[2,16,16,4], index: 1, kind: input, shape index: {}]   ;;  %s1065_s2 = inlined_call_operand.vmem [shape: f32[72,4], index: 2, kind: input, shape index: {}]   ;;  %s1066_s3 = inlined_call_operand.vmem [shape: f32[1,4], index: 3, kind: input, shape index: {}]   ;;  %s1067_s4 = inlined_call_operand.vmem [shape: f32[1,4], index: 4, kind: input, shape index: {}]   ;;  %s1068_s5 = inlined_call_operand.vmem [shape: f32[2,16,16,4], index: 5, kind: output, shape index: {}]  }
   0x1   :  { %s850_s20 = smov 0   ;;  %s852_s21 = smov 0  }
   0x2   :  { %s854_s22 = smov 0  }
   0x3 LB: > { %s24_s23 = sadd.s32 1, %s806_s20  ;;  %s27_s24 = sadd.s32 1, %s810_s21  ;;  %s814_s22 = sphi %s854_s22, %s15_s22   ;;  %s810_s21 = sphi %s852_s21, %s1072_s21   ;;  %s806_s20 = sphi %s850_s20, %s1071_s20   ;;  %s802_s19 = sphi %s848_s19, %s1070_s19   ;;  %s798_s18 = sphi %s846_s18, %s1069_s18  }
   0x4   : > { %p25_p0 = scmp.ge.s32.totalorder %s24_s23, 2  ;;  %p676_p1 = scmp.ge.s32.totalorder %s814_s22, 1 }
   0x5   : > { %p227_p2 = scmp.lt.s32.totalorder %s814_s22, 5 }
   0x6   : > { %s1074_s23 = smov (%p25_p0, %s24_s23), 0  ;;  %s1076_s24 = smov (!%p25_p0, %s27_s24), %s810_s21 }
   0x7   : > { %p228_p3 = pnand %p676_p1, %p227_p2  ;;  %p29_p4 = scmp.ge.s32.totalorder %s1076_s24, 2 }
   0x8   : > { %s677_s29 = sshll.u32 (!%p228_p3), %s798_s18, 3  ;;  %p276_p5 = scmp.lt.s32.totalorder (!%p228_p3), %s802_s19, 1 }
   0x9   : > { %s1078_s24 = smov (%p29_p4, %s1076_s24), 0  ;;  %231 = sbr.rel (%p228_p3) target bundleno = 198 (0xc6), region = 40 }
   0xa   : > { %p278_p6 = scmp.lt.s32.totalorder (!%p228_p3), %s677_s29, 15 }
   0xe   : > { %v332_v0 = vld [vmem:[%s1065_s2 + $0x40] sm:$0xff]  ;;  %v331_v1 = vld [vmem:[%s1065_s2 + $0x38] sm:$0xff]  ;;  %v330_v2 = vld [vmem:[%s1065_s2 + $0x30] sm:$0xff]  ;;  %s1080_s19 = smov (!%p276_p5, %s802_s19), 1  ;;  %s1082_s29 = smov (!%p278_p6, %s677_s29), 15  ;;  %vm333_vm0 = vcmask 588800  }
   0xf   : > { %708 = vmatpush.msra.mxu2 %v332_v0  ;;  %709 = vmatpush.msra.mxu3 %v332_v0  ;;  %v329_v3 = vld [vmem:[%s1065_s2 + $0x28] sm:$0xff]  ;;  %s679_s9 = sshll.u32 %s1080_s19, 5  ;;  %s678_s10 = sshll.u32 %s1082_s29, 1  ;;  %v328_v4 = vld [vmem:[%s1065_s2 + $0x20] sm:$0xff]  ;;  %v327_v5 = vld [vmem:[%s1065_s2 + $0x18] sm:$0xff]  ;;  %vm535_vm1 = vcmask 31744  }
  0x10   : > { %389 = vmatpush.msra.mxu0 %v332_v0  ;;  %707 = vmatpush.msra.mxu1 %v332_v0  ;;  %s282_s13 = sadd.s32 %s679_s9, %s678_s10  ;;  %v326_v6 = vld [vmem:[%s1065_s2 + $0x10] sm:$0xff]  ;;  %v325_v7 = vld [vmem:[%s1065_s2 + $0x8] sm:$0xff]  ;;  %v324_v8 = vld [vmem:[%s1065_s2] sm:$0xff] }
  0x11   : > { %711 = vmatpush.msra.mxu2 %v331_v1  ;;  %712 = vmatpush.msra.mxu3 %v331_v1  ;;  %s897_s16 = sshll.u32 %s282_s13, 3  ;;  %v949_v25 = vld [vmem:[%s1066_s3] ss:$0 sm:$0xff] }
  0x12   : > { %390 = vmatpush.msra.mxu0 %v331_v1  ;;  %710 = vmatpush.msra.mxu1 %v331_v1  ;;  %s909_s28 = scalar_lea.vmem %s1063_s0, %s897_s16  ;;  %v954_v26 = vld [vmem:[%s1067_s4] ss:$0 sm:$0xff]  ;;  %s960_s12 = scalar_lea.vmem %s1064_s1, %s897_s16 }
  0x13   : > { %714 = vmatpush.msra.mxu2 %v330_v2  ;;  %715 = vmatpush.msra.mxu3 %v330_v2  ;;  %v316_v9 = vld [vmem:[%s909_s28 + $0x40] sm:$0xff]  ;;  %v317_v13 = vld [vmem:[%s909_s28 + $0x48] sm:$0xff]  ;;  %v318_v17 = vld [vmem:[%s909_s28 + $0x50] sm:$0xff]  ;;  %s974_s15 = scalar_lea.vmem %s1068_s5, %s897_s16 }
  0x14   : > { %391 = vmatpush.msra.mxu0 %v330_v2  ;;  %713 = vmatpush.msra.mxu1 %v330_v2  ;;  %v320_v10 = vld [vmem:[%s909_s28 + $0x60] sm:$0xff]  ;;  %v321_v14 = vld [vmem:[%s909_s28 + $0x68] sm:$0xff]  ;;  %v322_v18 = vld [vmem:[%s909_s28 + $0x70] sm:$0xff] }
  0x15   : > { %717 = vmatpush.msra.mxu2 %v329_v3  ;;  %718 = vmatpush.msra.mxu3 %v329_v3  ;;  %v308_v11 = vld [vmem:[%s909_s28] sm:$0xff]  ;;  %v309_v15 = vld [vmem:[%s909_s28 + $0x8] sm:$0xff]  ;;  %v310_v19 = vld [vmem:[%s909_s28 + $0x10] sm:$0xff] }
  0x16   : > { %392 = vmatpush.msra.mxu0 %v329_v3  ;;  %716 = vmatpush.msra.mxu1 %v329_v3  ;;  %v312_v12 = vld [vmem:[%s909_s28 + $0x20] sm:$0xff]  ;;  %v313_v16 = vld [vmem:[%s909_s28 + $0x28] sm:$0xff]  ;;  %v314_v20 = vld [vmem:[%s909_s28 + $0x30] sm:$0xff] }
  0x17   : > { %720 = vmatpush.msra.mxu2 %v328_v4  ;;  %721 = vmatpush.msra.mxu3 %v328_v4  ;;  %v319_v21 = vld [vmem:[%s909_s28 + $0x58] sm:$0xff]  ;;  %v503_v33 = vld [vmem:[%s960_s12] sm:$0xff]  ;;  %v504_v57 = vld [vmem:[%s960_s12 + $0x8] sm:$0xff] }
  0x18   : > { %393 = vmatpush.msra.mxu0 %v328_v4  ;;  %719 = vmatpush.msra.mxu1 %v328_v4  ;;  %v323_v22 = vld [vmem:[%s909_s28 + $0x78] sm:$0xff]  ;;  %v507_v34 = vld [vmem:[%s960_s12 + $0x20] sm:$0xff]  ;;  %v508_v58 = vld [vmem:[%s960_s12 + $0x28] sm:$0xff] }
  0x19   : > { %723 = vmatpush.msra.mxu2 %v327_v5  ;;  %724 = vmatpush.msra.mxu3 %v327_v5  ;;  %v311_v23 = vld [vmem:[%s909_s28 + $0x18] sm:$0xff]  ;;  %v511_v45 = vld [vmem:[%s960_s12 + $0x40] sm:$0xff] }
  0x1a   : > { %394 = vmatpush.msra.mxu0 %v327_v5  ;;  %722 = vmatpush.msra.mxu1 %v327_v5  ;;  %v315_v24 = vld [vmem:[%s909_s28 + $0x38] sm:$0xff]  ;;  %v515_v46 = vld [vmem:[%s960_s12 + $0x60] sm:$0xff]  ;;  %v512_v5 = vld [vmem:[%s960_s12 + $0x48] sm:$0xff] }
  0x1b   : > { %726 = vmatpush.msra.mxu2 %v326_v6  ;;  %727 = vmatpush.msra.mxu3 %v326_v6 }
  0x1c   : > { %395 = vmatpush.msra.mxu0 %v326_v6  ;;  %725 = vmatpush.msra.mxu1 %v326_v6  ;;  %v516_v6 = vld [vmem:[%s960_s12 + $0x68] sm:$0xff] }
  0x1d   : > { %729 = vmatpush.msra.mxu2 %v325_v7  ;;  %730 = vmatpush.msra.mxu3 %v325_v7 }
  0x1e   : > { %396 = vmatpush.msra.mxu0 %v325_v7  ;;  %728 = vmatpush.msra.mxu1 %v325_v7 }
  0x1f   : > { %732 = vmatpush.msra.mxu2 %v324_v8  ;;  %733 = vmatpush.msra.mxu3 %v324_v8 }
  0x20   : > { %697 = vmatmul.msk.f32.vlgmr.msra.gmra.mxu2 %vm333_vm0, %v316_v9  ;;  %701 = vmatmul.msk.f32.vlgmr.msra.gmra.mxu3 %vm333_vm0, %v320_v10 }
  0x21   : > { %397 = vmatpush.msra.mxu0 %v324_v8  ;;  %731 = vmatpush.msra.mxu1 %v324_v8 }
  0x22   : > { %689 = vmatmul.msk.f32.vlgmr.msra.gmra.mxu0 %vm333_vm0, %v308_v11  ;;  %693 = vmatmul.msk.f32.vlgmr.msra.gmra.mxu1 %vm333_vm0, %v312_v12 }
  0x28   : > { %698 = vmatmul.msk.f32.gmra.mxu2 %vm333_vm0, %v317_v13  ;;  %702 = vmatmul.msk.f32.gmra.mxu3 %vm333_vm0, %v321_v14 }
  0x2a   : > { %690 = vmatmul.msk.f32.gmra.mxu0 %vm333_vm0, %v309_v15  ;;  %694 = vmatmul.msk.f32.gmra.mxu1 %vm333_vm0, %v313_v16 }
  0x30   : > { %699 = vmatmul.msk.f32.gmra.mxu2 %vm333_vm0, %v318_v17  ;;  %703 = vmatmul.msk.f32.gmra.mxu3 %vm333_vm0, %v322_v18  ;;  %v505_v17 = vld [vmem:[%s960_s12 + $0x10] sm:$0xff] }
  0x31   : > { %v509_v18 = vld [vmem:[%s960_s12 + $0x30] sm:$0xff] }
  0x32   : > { %691 = vmatmul.msk.f32.gmra.mxu0 %vm333_vm0, %v310_v19  ;;  %695 = vmatmul.msk.f32.gmra.mxu1 %vm333_vm0, %v314_v20 }
  0x38   : > { %700 = vmatmul.msk.f32.gmra.mxu2 %vm333_vm0, %v319_v21  ;;  %704 = vmatmul.msk.f32.gmra.mxu3 %vm333_vm0, %v323_v22 }
  0x3a   : > { %692 = vmatmul.msk.f32.gmra.mxu0 %vm333_vm0, %v311_v23  ;;  %696 = vmatmul.msk.f32.gmra.mxu1 %vm333_vm0, %v315_v24 }
  0x9f   : > { %v399_v27 = vpop.f32.mrf.mxu0  ;;  %v411_v28 = vpop.f32.mrf.mxu1 }
  0xa0   : > { %v451_v29 = vmul.f32 %v949_v25, %v399_v27  ;;  %v455_v30 = vmul.f32 %v949_v25, %v411_v28 }
  0xa2   : > { %v471_v31 = vadd.f32 %v954_v26, %v451_v29  ;;  %v475_v32 = vadd.f32 %v954_v26, %v455_v30 }
  0xa3   : > { %v423_v35 = vpop.f32.mrf.mxu2  ;;  %v435_v36 = vpop.f32.mrf.mxu3 }
  0xa4   : > { %v487_v37 = vmax.f32 %v471_v31, 0.0  ;;  %v491_v38 = vmax.f32 %v475_v32, 0.0  ;;  %v459_v39 = vmul.f32 %v949_v25, %v423_v35  ;;  %v463_v40 = vmul.f32 %v949_v25, %v435_v36  ;;  %v513_v31 = vld [vmem:[%s960_s12 + $0x50] sm:$0xff] }
  0xa5   : > { %v517_v32 = vld [vmem:[%s960_s12 + $0x70] sm:$0xff] }
  0xa6   : > { %v519_v41 = vadd.f32 %v503_v33, %v487_v37  ;;  %v523_v42 = vadd.f32 %v507_v34, %v491_v38  ;;  %v479_v43 = vadd.f32 %v954_v26, %v459_v39  ;;  %v483_v44 = vadd.f32 %v954_v26, %v463_v40 }
  0xa7   : > { %v402_v47 = vpop.f32.mrf.mxu0  ;;  %v414_v48 = vpop.f32.mrf.mxu1 }
  0xa8   : > { %536 = vst.msk [vmem:[%s974_s15] sm:$0xff] %vm535_vm1, %v519_v41  ;;  %v495_v49 = vmax.f32 %v479_v43, 0.0  ;;  %v499_v50 = vmax.f32 %v483_v44, 0.0  ;;  %v452_v51 = vmul.f32 %v949_v25, %v402_v47  ;;  %v456_v52 = vmul.f32 %v949_v25, %v414_v48  ;;  %v506_v43 = vld [vmem:[%s960_s12 + $0x18] sm:$0xff] }
  0xa9   : > { %540 = vst.msk [vmem:[%s974_s15 + $0x20] sm:$0xff] %vm535_vm1, %v523_v42  ;;  %v510_v44 = vld [vmem:[%s960_s12 + $0x38] sm:$0xff] }
  0xaa   : > { %v527_v53 = vadd.f32 %v511_v45, %v495_v49  ;;  %v531_v54 = vadd.f32 %v515_v46, %v499_v50  ;;  %v472_v55 = vadd.f32 %v954_v26, %v452_v51  ;;  %v476_v56 = vadd.f32 %v954_v26, %v456_v52 }
  0xab   : > { %v426_v59 = vpop.f32.mrf.mxu2  ;;  %v438_v60 = vpop.f32.mrf.mxu3 }
  0xac   : > { %544 = vst.msk [vmem:[%s974_s15 + $0x40] sm:$0xff] %vm535_vm1, %v527_v53  ;;  %v488_v61 = vmax.f32 %v472_v55, 0.0  ;;  %v492_v62 = vmax.f32 %v476_v56, 0.0  ;;  %v460_v63 = vmul.f32 %v949_v25, %v426_v59  ;;  %v464_v0 = vmul.f32 %v949_v25, %v438_v60  ;;  %v514_v55 = vld [vmem:[%s960_s12 + $0x58] sm:$0xff] }
  0xad   : > { %548 = vst.msk [vmem:[%s974_s15 + $0x60] sm:$0xff] %vm535_vm1, %v531_v54  ;;  %v518_v56 = vld [vmem:[%s960_s12 + $0x78] sm:$0xff] }
  0xae   : > { %v520_v1 = vadd.f32 %v504_v57, %v488_v61  ;;  %v524_v2 = vadd.f32 %v508_v58, %v492_v62  ;;  %v480_v3 = vadd.f32 %v954_v26, %v460_v63  ;;  %v484_v4 = vadd.f32 %v954_v26, %v464_v0 }
  0xaf   : > { %v405_v7 = vpop.f32.mrf.mxu0  ;;  %v417_v8 = vpop.f32.mrf.mxu1 }
  0xb0   : > { %537 = vst.msk [vmem:[%s974_s15 + $0x8] sm:$0xff] %vm535_vm1, %v520_v1  ;;  %v496_v9 = vmax.f32 %v480_v3, 0.0  ;;  %v500_v10 = vmax.f32 %v484_v4, 0.0  ;;  %v453_v11 = vmul.f32 %v949_v25, %v405_v7  ;;  %v457_v12 = vmul.f32 %v949_v25, %v417_v8 }
  0xb1   : > { %541 = vst.msk [vmem:[%s974_s15 + $0x28] sm:$0xff] %vm535_vm1, %v524_v2 }
  0xb2   : > { %v528_v13 = vadd.f32 %v512_v5, %v496_v9  ;;  %v532_v14 = vadd.f32 %v516_v6, %v500_v10  ;;  %v473_v15 = vadd.f32 %v954_v26, %v453_v11  ;;  %v477_v16 = vadd.f32 %v954_v26, %v457_v12 }
  0xb3   : > { %v429_v19 = vpop.f32.mrf.mxu2  ;;  %v441_v20 = vpop.f32.mrf.mxu3 }
  0xb4   : > { %545 = vst.msk [vmem:[%s974_s15 + $0x48] sm:$0xff] %vm535_vm1, %v528_v13  ;;  %v489_v21 = vmax.f32 %v473_v15, 0.0  ;;  %v493_v22 = vmax.f32 %v477_v16, 0.0  ;;  %v461_v23 = vmul.f32 %v949_v25, %v429_v19  ;;  %v465_v24 = vmul.f32 %v949_v25, %v441_v20 }
  0xb5   : > { %549 = vst.msk [vmem:[%s974_s15 + $0x68] sm:$0xff] %vm535_vm1, %v532_v14 }
  0xb6   : > { %v521_v27 = vadd.f32 %v505_v17, %v489_v21  ;;  %v525_v28 = vadd.f32 %v509_v18, %v493_v22  ;;  %v481_v29 = vadd.f32 %v954_v26, %v461_v23  ;;  %v485_v30 = vadd.f32 %v954_v26, %v465_v24 }
  0xb7   : > { %v408_v33 = vpop.f32.mrf.mxu0  ;;  %v420_v34 = vpop.f32.mrf.mxu1 }
  0xb8   : > { %538 = vst.msk [vmem:[%s974_s15 + $0x10] sm:$0xff] %vm535_vm1, %v521_v27  ;;  %v497_v35 = vmax.f32 %v481_v29, 0.0  ;;  %v501_v36 = vmax.f32 %v485_v30, 0.0  ;;  %v454_v37 = vmul.f32 %v949_v25, %v408_v33  ;;  %v458_v38 = vmul.f32 %v949_v25, %v420_v34 }
  0xb9   : > { %542 = vst.msk [vmem:[%s974_s15 + $0x30] sm:$0xff] %vm535_vm1, %v525_v28 }
  0xba   : > { %v529_v39 = vadd.f32 %v513_v31, %v497_v35  ;;  %v533_v40 = vadd.f32 %v517_v32, %v501_v36  ;;  %v474_v41 = vadd.f32 %v954_v26, %v454_v37  ;;  %v478_v42 = vadd.f32 %v954_v26, %v458_v38 }
  0xbb   : > { %v432_v45 = vpop.f32.mrf.mxu2  ;;  %v444_v46 = vpop.f32.mrf.mxu3 }
  0xbc   : > { %546 = vst.msk [vmem:[%s974_s15 + $0x50] sm:$0xff] %vm535_vm1, %v529_v39  ;;  %v490_v47 = vmax.f32 %v474_v41, 0.0  ;;  %v494_v48 = vmax.f32 %v478_v42, 0.0  ;;  %v462_v49 = vmul.f32 %v949_v25, %v432_v45  ;;  %v466_v50 = vmul.f32 %v949_v25, %v444_v46 }
  0xbd   : > { %550 = vst.msk [vmem:[%s974_s15 + $0x70] sm:$0xff] %vm535_vm1, %v533_v40 }
  0xbe   : > { %v522_v51 = vadd.f32 %v506_v43, %v490_v47  ;;  %v526_v52 = vadd.f32 %v510_v44, %v494_v48  ;;  %v482_v53 = vadd.f32 %v954_v26, %v462_v49  ;;  %v486_v54 = vadd.f32 %v954_v26, %v466_v50 }
  0xc0   : > { %539 = vst.msk [vmem:[%s974_s15 + $0x18] sm:$0xff] %vm535_vm1, %v522_v51  ;;  %v498_v57 = vmax.f32 %v482_v53, 0.0  ;;  %v502_v58 = vmax.f32 %v486_v54, 0.0 }
  0xc1   : > { %543 = vst.msk [vmem:[%s974_s15 + $0x38] sm:$0xff] %vm535_vm1, %v526_v52 }
  0xc2   : > { %v530_v59 = vadd.f32 %v514_v55, %v498_v57  ;;  %v534_v60 = vadd.f32 %v518_v56, %v502_v58 }
  0xc4   : > { %547 = vst.msk [vmem:[%s974_s15 + $0x58] sm:$0xff] %vm535_vm1, %v530_v59 }
  0xc5   : > { %551 = vst.msk [vmem:[%s974_s15 + $0x78] sm:$0xff] %vm535_vm1, %v534_v60 }
  0xc6 PF: > { %s15_s22 = sadd.s32 1, %s814_s22   ;;  %s1069_s18 = smov %s806_s20 }
  0xc7   : > { %p12_p7 = scmp.ge.s32.totalorder %s15_s22, 6   ;;  %s1070_s19 = smov %s810_s21 }
  0xc8   : > { %s1071_s20 = smov %s1074_s23  ;;  %s1072_s21 = smov %s1078_s24 }
  0xc9   :  { %14 = sbr.rel (!%p12_p7) target bundleno = 3 (0x3), region = 73 }

</bundles_post_ra>
